<compile_context>
chip_gen: v7x
topology: tpu7x:2x2x1
jax: 0.10.0
libtpu: 0.0.40
codegen_flags: <defaults>
</compile_context>

<pallas_src>
import functools

import jax
import jax.numpy as jnp
from jax import lax
from jax.experimental import pallas as pl
from jax.experimental.pallas import tpu as pltpu


# ---------------- wrapper-side weight re-layout (weight-only, constant-folded) ----------------

def _conv_band(Wk, W):
    """3x3 conv weight (3,3,Ci,Co) -> banded matrices (3, W*Ci, W*Co).

    band[ky, wi*Ci+ci, wo*Co+co] = Wk[ky, wi-wo+1, ci, co] (0 if the tap falls outside the
    kernel), so   out_rows = sum_ky in_rows[h+ky-1 (zero pad), :] @ band[ky]   is a SAME 3x3
    convolution with the W-direction zero padding folded into the clipped bands.
    """
    KH, KW, Ci, Co = Wk.shape
    wi = jnp.arange(W)[:, None]
    wo = jnp.arange(W)[None, :]
    kx = wi - wo + (KW // 2)
    valid = (kx >= 0) & (kx < KW)
    g = Wk[:, jnp.clip(kx, 0, KW - 1), :, :]              # (KH, wi, wo, Ci, Co)
    g = g * valid[None, :, :, None, None].astype(Wk.dtype)
    g = jnp.transpose(g, (0, 1, 3, 2, 4))                 # (KH, wi, Ci, wo, Co)
    return g.reshape(KH, W * Ci, W * Co)


def _deconv_band(Wd, W0):
    """ConvTranspose2d(k=2,s=2) weight (Cx,2,2,Co) -> parity bands (2, W0*Cx, 2*W0*Co).

    band[a, w0*Cx+cx, w*Co+co] = Wd[cx, a, w-2*w0, co] (0 unless w-2*w0 in {0,1}), so
    x_row(h0) @ band[a] produces upsampled output row h = 2*h0 + a.
    """
    Cx, A, B, Co = Wd.shape
    W = 2 * W0
    w0 = jnp.arange(W0)[:, None]
    w = jnp.arange(W)[None, :]
    b = w - 2 * w0
    valid = (b >= 0) & (b < B)
    g = Wd[:, :, jnp.clip(b, 0, B - 1), :]                # (Cx, A, w0, w, Co)
    g = g * valid[None, None, :, :, None].astype(Wd.dtype)
    g = jnp.transpose(g, (1, 2, 0, 3, 4))                 # (A, w0, Cx, w, Co)
    return g.reshape(A, W0 * Cx, W * Co)


def _diag_band(Wp, W):
    """1x1 conv weight (Ci,Co) -> block-diagonal (W*Ci, W*Co) for the (rows, W*C) slab layout."""
    return jnp.kron(jnp.eye(W, dtype=Wp.dtype), Wp)


# --------------------------------------- fused kernel ---------------------------------------

def _upblock_fused_kernel(H, x2_ref, skip_ref, b1t_ref, wd_ref, w1_ref, wr_ref,
                          w2_ref, bd_ref, b2br_ref, o_ref, cat_ref, h1_ref):
    f32 = jnp.float32
    BH, WCo = o_ref.shape              # B_blk*H rows, W*Co lanes (lane-dense, 128 here)
    WCs = skip_ref.shape[1]

    # Per-row masks.  Block rows are batch-major: local batch j owns rows j*H .. j*H+H-1,
    # so h = row % H is the row index inside that image.  The masks implement the
    # H-direction zero padding of the SAME convs AND keep batch elements from leaking into
    # each other through the shifted windows — no halo zeroing stores are needed at all.
    row = lax.broadcasted_iota(jnp.int32, (BH, 1), 0)
    h = row % H
    is_even = (h % 2) == 0             # parity of the upsampled output row
    not_first = h != 0                 # row h-1 exists inside this image
    not_last = h != (H - 1)            # row h+1 exists inside this image

    # ---- ConvTranspose2d(k=2,s=2), row-duplicated form: x2[r] = x[r // 2], so
    # y[r] = x2[r] @ band[r % 2].  Two M=BH matmuls + one parity select; the upsampled rows
    # come out already interleaved (no per-row scatter stores). ----
    x2 = x2_ref[...]
    ya = jnp.dot(x2, wd_ref[0], preferred_element_type=f32)   # even output rows
    yb = jnp.dot(x2, wd_ref[1], preferred_element_type=f32)   # odd output rows
    y = jnp.where(is_even, ya, yb) + bd_ref[...]              # (BH, W*Co)

    # ---- cat = [y, skip] materialized once in VMEM (1-row halo top/bottom; the halo rows
    # are never zeroed because every read of them is masked away). ----
    cat_ref[1:BH + 1, 0:WCo] = y
    cat_ref[1:BH + 1, WCo:WCo + WCs] = skip_ref[...]

    # ---- conv1 + (b1 + relu(time MLP)) + ReLU: 3 banded matmuls, bias-seeded accumulator ----
    acc = b1t_ref[...]
    acc = acc + jnp.dot(jnp.where(not_first, cat_ref[0:BH, :], 0.0), w1_ref[0],
                        preferred_element_type=f32)
    acc = acc + jnp.dot(cat_ref[1:BH + 1, :], w1_ref[1], preferred_element_type=f32)
    acc = acc + jnp.dot(jnp.where(not_last, cat_ref[2:BH + 2, :], 0.0), w1_ref[2],
                        preferred_element_type=f32)
    h1_ref[1:BH + 1, :] = jnp.maximum(acc, 0.0)

    # ---- conv2 + b2 + 1x1 residual of cat + br: 4 matmuls into one accumulator ----
    out = b2br_ref[...] + jnp.dot(cat_ref[1:BH + 1, :], wr_ref[...],
                                  preferred_element_type=f32)
    out = out + jnp.dot(jnp.where(not_first, h1_ref[0:BH, :], 0.0), w2_ref[0],
                        preferred_element_type=f32)
    out = out + jnp.dot(h1_ref[1:BH + 1, :], w2_ref[1], preferred_element_type=f32)
    out = out + jnp.dot(jnp.where(not_last, h1_ref[2:BH + 2, :], 0.0), w2_ref[2],
                        preferred_element_type=f32)
    o_ref[...] = out                                          # (BH, 128) lane-dense store


# ----------------------------------------- wrapper ------------------------------------------

def _pick_batch_block(n, h):
    """Largest per-step batch block with M = b*h <= 256 matmul rows, keeping >= 2 grid steps
    when possible so both v7x TensorCores get work (v5e/v6e have a single TC)."""
    best = 1
    for b in range(1, n + 1):
        if n % b == 0 and b * h <= 256 and (n // b >= 2 or n == 1):
            best = b
    return best


@jax.jit
def upblock_forward(x, skip, time_emb, params):
    N, H0, W0, Cx = x.shape
    Co = params['bd'].shape[0]
    Cs = skip.shape[-1]
    H, W = 2 * H0, 2 * W0
    WCo, WCs = W * Co, W * Cs
    WCin = WCo + WCs
    f32 = jnp.float32

    B_blk = _pick_batch_block(N, H)
    BH = B_blk * H

    # banded / block-diagonal weight re-layout (weight-only, tiny, constant-folded under jit)
    wd_band = _deconv_band(params['Wd'], W0)                                  # (2, W0*Cx, WCo)
    w1_band = jnp.concatenate(
        [_conv_band(params['W1'][:, :, :Co, :], W),                           # y channels
         _conv_band(params['W1'][:, :, Co:, :], W)], axis=1)                  # skip channels
    w2_band = _conv_band(params['W2'], W)                                     # (3, WCo, WCo)
    wr_band = jnp.concatenate(
        [_diag_band(params['Wr'][:Co, :], W),
         _diag_band(params['Wr'][Co:, :], W)], axis=0)                        # (WCin, WCo)

    # time-MLP hoisted out of the per-pixel path; folded with b1 into a per-row bias slab
    temb = jax.nn.relu(time_emb @ params['Wt'] + params['bt'])                # (N, Co)
    b1t_rows = jnp.repeat(jnp.tile(params['b1'][None, :] + temb, (1, W)),
                          H, axis=0)                                          # (N*H, WCo)
    bd_slab = jnp.tile(params['bd'][None, :], (1, W))                         # (1, WCo)
    b2br_slab = jnp.tile((params['b2'] + params['br'])[None, :], (1, W))      # (1, WCo)

    # lane-dense activation slabs; x rows duplicated so the deconv runs at M = B_blk*H
    x2 = jnp.repeat(x.reshape(N * H0, W0 * Cx), 2, axis=0)                    # (N*H, W0*Cx)
    skip_r = skip.reshape(N * H, WCs)                                         # (N*H, WCs)

    kernel = functools.partial(_upblock_fused_kernel, H)
    out_slab = pl.pallas_call(
        kernel,
        out_shape=jax.ShapeDtypeStruct((N * H, WCo), f32),
        grid=(N // B_blk,),
        in_specs=[
            pl.BlockSpec((BH, W0 * Cx), lambda i: (i, 0)),         # x2 rows (duplicated)
            pl.BlockSpec((BH, WCs), lambda i: (i, 0)),             # skip rows
            pl.BlockSpec((BH, WCo), lambda i: (i, 0)),             # b1 + relu(temb) rows
            pl.BlockSpec((2, W0 * Cx, WCo), lambda i: (0, 0, 0)),  # deconv parity bands
            pl.BlockSpec((3, WCin, WCo), lambda i: (0, 0, 0)),     # conv1 bands
            pl.BlockSpec((WCin, WCo), lambda i: (0, 0)),           # 1x1 residual block-diag
            pl.BlockSpec((3, WCo, WCo), lambda i: (0, 0, 0)),      # conv2 bands
            pl.BlockSpec((1, WCo), lambda i: (0, 0)),              # deconv bias slab
            pl.BlockSpec((1, WCo), lambda i: (0, 0)),              # (b2 + br) slab
        ],
        out_specs=pl.BlockSpec((BH, WCo), lambda i: (i, 0)),
        scratch_shapes=[pltpu.VMEM((BH + 2, WCin), f32),           # cat = [y, skip] (+halos)
                        pltpu.VMEM((BH + 2, WCo), f32)],           # h1 (+halos)
        compiler_params=pltpu.CompilerParams(
            dimension_semantics=("parallel",)),
    )(x2, skip_r, b1t_rows, wd_band, w1_band, wr_band, w2_band,
      bd_slab, b2br_slab)

    return out_slab.reshape(N, H, W, Co)                          # free trailing-dim split


# ------------------------------------ pure-JAX reference ------------------------------------

def upblock_reference(x, skip, time_emb, params):
    N, H0, W0, _ = x.shape
    Co = params['bd'].shape[0]
    # ConvTranspose2d k=2 s=2: each input pixel scatters a 2x2 output block.
    y = (jnp.einsum('nhwc,cabo->nhawbo', x, params['Wd'])
           .reshape(N, 2 * H0, 2 * W0, Co) + params['bd'])
    cat = jnp.concatenate([y, skip], axis=-1)
    dn = ('NHWC', 'HWIO', 'NHWC')
    c1 = lax.conv_general_dilated(cat, params['W1'], (1, 1), 'SAME',
                                  dimension_numbers=dn) + params['b1']
    temb = jax.nn.relu(time_emb @ params['Wt'] + params['bt'])
    h1 = jax.nn.relu(c1 + temb[:, None, None, :])
    c2 = lax.conv_general_dilated(h1, params['W2'], (1, 1), 'SAME',
                                  dimension_numbers=dn) + params['b2']
    resid = jnp.einsum('nhwc,co->nhwo', cat, params['Wr']) + params['br']
    return c2 + resid


# -------------------------------------------- main -------------------------------------------

if __name__ == "__main__":
    key = jax.random.PRNGKey(0)
    N, H0, W0 = 8, 8, 8          # x spatial 8x8 -> upsampled 16x16; N=8 -> B_blk=4, grid=(2,)
    Cx, Cs, Co, T = 8, 4, 8, 16  # x_channel, skip_channel, out_channel, time_emb_dim
    Cin = Co + Cs                # input channels of res1

    ks = jax.random.split(key, 13)
    params = {
        'Wd': 0.1 * jax.random.normal(ks[0], (Cx, 2, 2, Co), jnp.float32),   # ConvTranspose2d (in,kh,kw,out)
        'bd': 0.1 * jax.random.normal(ks[1], (Co,), jnp.float32),
        'W1': 0.1 * jax.random.normal(ks[2], (3, 3, Cin, Co), jnp.float32),  # conv1 HWIO
        'b1': 0.1 * jax.random.normal(ks[3], (Co,), jnp.float32),
        'Wt': 0.1 * jax.random.normal(ks[4], (T, Co), jnp.float32),          # time Linear
        'bt': 0.1 * jax.random.normal(ks[5], (Co,), jnp.float32),
        'W2': 0.1 * jax.random.normal(ks[6], (3, 3, Co, Co), jnp.float32),   # conv2 HWIO
        'b2': 0.1 * jax.random.normal(ks[7], (Co,), jnp.float32),
        'Wr': 0.1 * jax.random.normal(ks[8], (Cin, Co), jnp.float32),        # 1x1 residual conv
        'br': 0.1 * jax.random.normal(ks[9], (Co,), jnp.float32),
    }
    x = jax.random.normal(ks[10], (N, H0, W0, Cx), jnp.float32)              # NHWC
    skip = jax.random.normal(ks[11], (N, 2 * H0, 2 * W0, Cs), jnp.float32)   # NHWC
    time_emb = jax.random.normal(ks[12], (N, T), jnp.float32)

    out = jax.block_until_ready(upblock_forward(x, skip, time_emb, params))
    ref = upblock_reference(x, skip, time_emb, params)
    assert out.shape == (N, 2 * H0, 2 * W0, Co)
    assert jnp.allclose(out, ref, atol=1e-4, rtol=1e-4), \
        f"max abs err {float(jnp.max(jnp.abs(out - ref)))}"
    print("KERNEL_OK")
</pallas_src>

<mosaic_0001>
module attributes {stable_mosaic.version = 11 : i64} {
  func.func @_upblock_fused_kernel(%arg0: i32, %arg1: memref<64x64xf32, #tpu.memory_space<vmem>>, %arg2: memref<64x64xf32, #tpu.memory_space<vmem>>, %arg3: memref<64x128xf32, #tpu.memory_space<vmem>>, %arg4: memref<2x64x128xf32, #tpu.memory_space<vmem>>, %arg5: memref<3x192x128xf32, #tpu.memory_space<vmem>>, %arg6: memref<192x128xf32, #tpu.memory_space<vmem>>, %arg7: memref<3x128x128xf32, #tpu.memory_space<vmem>>, %arg8: memref<1x128xf32, #tpu.memory_space<vmem>>, %arg9: memref<1x128xf32, #tpu.memory_space<vmem>>, %arg10: memref<64x128xf32, #tpu.memory_space<vmem>>, %arg11: memref<66x192xf32, #tpu.memory_space<vmem>>, %arg12: memref<66x128xf32, #tpu.memory_space<vmem>>) attributes {dimension_semantics = [#tpu.dimension_semantics<parallel>], iteration_bounds = array<i64: 2>, scalar_prefetch = 0 : i64, scratch_operands = 2 : i64, tpu.core_type = #tpu.core_type<tc>, window_params = [{transform_indices = @transform_0, window_bounds = array<i64: 64, 64>}, {transform_indices = @transform_1, window_bounds = array<i64: 64, 64>}, {transform_indices = @transform_2, window_bounds = array<i64: 64, 128>}, {pipeline_mode = #tpu.pipeline_mode<synchronous>, transform_indices = @transform_3, window_bounds = array<i64: 2, 64, 128>}, {pipeline_mode = #tpu.pipeline_mode<synchronous>, transform_indices = @transform_4, window_bounds = array<i64: 3, 192, 128>}, {pipeline_mode = #tpu.pipeline_mode<synchronous>, transform_indices = @transform_5, window_bounds = array<i64: 192, 128>}, {pipeline_mode = #tpu.pipeline_mode<synchronous>, transform_indices = @transform_6, window_bounds = array<i64: 3, 128, 128>}, {pipeline_mode = #tpu.pipeline_mode<synchronous>, transform_indices = @transform_7, window_bounds = array<i64: 1, 128>}, {pipeline_mode = #tpu.pipeline_mode<synchronous>, transform_indices = @transform_8, window_bounds = array<i64: 1, 128>}, {transform_indices = @transform_9, window_bounds = array<i64: 64, 128>}]} {
    %0 = tpu.iota {dimensions = array<i32: 0>} : vector<64x1xi32>
    %c16_i32 = arith.constant 16 : i32
    %c0_i32 = arith.constant 0 : i32
    %1 = arith.cmpi eq, %c16_i32, %c0_i32 : i32
    %c1_i32 = arith.constant 1 : i32
    %2 = arith.select %1, %c1_i32, %c16_i32 : i32
    %3 = vector.broadcast %2 : i32 to vector<64x1xi32>
    %4 = arith.remsi %0, %3 : vector<64x1xi32>
    %c0_i32_0 = arith.constant 0 : i32
    %5 = vector.broadcast %c0_i32_0 : i32 to vector<64x1xi32>
    %6 = arith.cmpi ne, %4, %5 : vector<64x1xi32>
    %c0_i32_1 = arith.constant 0 : i32
    %7 = vector.broadcast %c0_i32_1 : i32 to vector<64x1xi32>
    %8 = arith.cmpi slt, %4, %7 : vector<64x1xi32>
    %c0_i32_2 = arith.constant 0 : i32
    %9 = arith.cmpi slt, %2, %c0_i32_2 : i32
    %10 = vector.broadcast %9 : i1 to vector<64x1xi1>
    %11 = vector.broadcast %10 : vector<64x1xi1> to vector<64x1xi1>
    %12 = arith.xori %8, %11 : vector<64x1xi1>
    %13 = arith.andi %12, %6 : vector<64x1xi1>
    %14 = vector.broadcast %2 : i32 to vector<64x1xi32>
    %15 = arith.addi %4, %14 : vector<64x1xi32>
    %16 = arith.select %13, %15, %4 : vector<64x1xi1>, vector<64x1xi32>
    %c2_i32 = arith.constant 2 : i32
    %c0_i32_3 = arith.constant 0 : i32
    %17 = arith.cmpi eq, %c2_i32, %c0_i32_3 : i32
    %c1_i32_4 = arith.constant 1 : i32
    %18 = arith.select %17, %c1_i32_4, %c2_i32 : i32
    %19 = vector.broadcast %18 : i32 to vector<64x1xi32>
    %20 = arith.remsi %16, %19 : vector<64x1xi32>
    %c0_i32_5 = arith.constant 0 : i32
    %21 = vector.broadcast %c0_i32_5 : i32 to vector<64x1xi32>
    %22 = arith.cmpi ne, %20, %21 : vector<64x1xi32>
    %c0_i32_6 = arith.constant 0 : i32
    %23 = vector.broadcast %c0_i32_6 : i32 to vector<64x1xi32>
    %24 = arith.cmpi slt, %20, %23 : vector<64x1xi32>
    %c0_i32_7 = arith.constant 0 : i32
    %25 = arith.cmpi slt, %18, %c0_i32_7 : i32
    %26 = vector.broadcast %25 : i1 to vector<64x1xi1>
    %27 = vector.broadcast %26 : vector<64x1xi1> to vector<64x1xi1>
    %28 = arith.xori %24, %27 : vector<64x1xi1>
    %29 = arith.andi %28, %22 : vector<64x1xi1>
    %30 = vector.broadcast %18 : i32 to vector<64x1xi32>
    %31 = arith.addi %20, %30 : vector<64x1xi32>
    %32 = arith.select %29, %31, %20 : vector<64x1xi1>, vector<64x1xi32>
    %c0_i32_8 = arith.constant 0 : i32
    %33 = vector.broadcast %c0_i32_8 : i32 to vector<64x1xi32>
    %34 = arith.cmpi eq, %32, %33 : vector<64x1xi32>
    %c0_i32_9 = arith.constant 0 : i32
    %35 = vector.broadcast %c0_i32_9 : i32 to vector<64x1xi32>
    %36 = arith.cmpi ne, %16, %35 : vector<64x1xi32>
    %c15_i32 = arith.constant 15 : i32
    %37 = vector.broadcast %c15_i32 : i32 to vector<64x1xi32>
    %38 = arith.cmpi ne, %16, %37 : vector<64x1xi32>
    %c0 = arith.constant 0 : index
    %c0_10 = arith.constant 0 : index
    %39 = vector.load %arg1[%c0, %c0_10] : memref<64x64xf32, #tpu.memory_space<vmem>>, vector<64x64xf32>
    %c0_11 = arith.constant 0 : index
    %c0_12 = arith.constant 0 : index
    %c0_13 = arith.constant 0 : index
    %40 = vector.load %arg4[%c0_11, %c0_12, %c0_13] : memref<2x64x128xf32, #tpu.memory_space<vmem>>, vector<1x64x128xf32>
    %41 = vector.shape_cast %40 : vector<1x64x128xf32> to vector<64x128xf32>
    %cst = arith.constant dense<0.000000e+00> : vector<64x128xf32>
    %42 = tpu.matmul %39, %41, %cst {dimension_numbers = #tpu.dot_dimension_numbers<[1], [0], [0], [1], [0, 0, 1, 1], [], []>} : vector<64x64xf32>, vector<64x128xf32>, vector<64x128xf32> -> vector<64x128xf32>
    %c1 = arith.constant 1 : index
    %c0_14 = arith.constant 0 : index
    %c0_15 = arith.constant 0 : index
    %43 = vector.load %arg4[%c1, %c0_14, %c0_15] : memref<2x64x128xf32, #tpu.memory_space<vmem>>, vector<1x64x128xf32>
    %44 = vector.shape_cast %43 : vector<1x64x128xf32> to vector<64x128xf32>
    %cst_16 = arith.constant dense<0.000000e+00> : vector<64x128xf32>
    %45 = tpu.matmul %39, %44, %cst_16 {dimension_numbers = #tpu.dot_dimension_numbers<[1], [0], [0], [1], [0, 0, 1, 1], [], []>} : vector<64x64xf32>, vector<64x128xf32>, vector<64x128xf32> -> vector<64x128xf32>
    %46 = vector.shape_cast %34 : vector<64x1xi1> to vector<64x1xi1>
    %47 = vector.broadcast %46 : vector<64x1xi1> to vector<64x128xi1>
    %48 = arith.select %47, %42, %45 : vector<64x128xi1>, vector<64x128xf32>
    %c0_17 = arith.constant 0 : index
    %c0_18 = arith.constant 0 : index
    %49 = vector.load %arg8[%c0_17, %c0_18] : memref<1x128xf32, #tpu.memory_space<vmem>>, vector<1x128xf32>
    %50 = vector.broadcast %49 : vector<1x128xf32> to vector<64x128xf32>
    %51 = arith.addf %48, %50 : vector<64x128xf32>
    %c1_19 = arith.constant 1 : index
    %c0_20 = arith.constant 0 : index
    %52 = vector.load %arg11[%c1_19, %c0_20] : memref<66x192xf32, #tpu.memory_space<vmem>>, vector<64x128xf32>
    tpu.vector_store %arg11[%c1_19, %c0_20], %51 {strides = array<i32>} : memref<66x192xf32, #tpu.memory_space<vmem>>, vector<64x128xf32>,
    %c0_21 = arith.constant 0 : index
    %c0_22 = arith.constant 0 : index
    %53 = vector.load %arg2[%c0_21, %c0_22] : memref<64x64xf32, #tpu.memory_space<vmem>>, vector<64x64xf32>
    %c1_23 = arith.constant 1 : index
    %c128 = arith.constant 128 : index
    %54 = vector.load %arg11[%c1_23, %c128] : memref<66x192xf32, #tpu.memory_space<vmem>>, vector<64x64xf32>
    tpu.vector_store %arg11[%c1_23, %c128], %53 {strides = array<i32>} : memref<66x192xf32, #tpu.memory_space<vmem>>, vector<64x64xf32>,
    %c0_24 = arith.constant 0 : index
    %c0_25 = arith.constant 0 : index
    %55 = vector.load %arg3[%c0_24, %c0_25] : memref<64x128xf32, #tpu.memory_space<vmem>>, vector<64x128xf32>
    %c0_26 = arith.constant 0 : index
    %c0_27 = arith.constant 0 : index
    %56 = vector.load %arg11[%c0_26, %c0_27] : memref<66x192xf32, #tpu.memory_space<vmem>>, vector<64x192xf32>
    %cst_28 = arith.constant 0.000000e+00 : f32
    %57 = vector.shape_cast %36 : vector<64x1xi1> to vector<64x1xi1>
    %58 = vector.broadcast %57 : vector<64x1xi1> to vector<64x192xi1>
    %59 = vector.broadcast %cst_28 : f32 to vector<64x192xf32>
    %60 = arith.select %58, %56, %59 : vector<64x192xi1>, vector<64x192xf32>
    %c0_29 = arith.constant 0 : index
    %c0_30 = arith.constant 0 : index
    %c0_31 = arith.constant 0 : index
    %61 = vector.load %arg5[%c0_29, %c0_30, %c0_31] : memref<3x192x128xf32, #tpu.memory_space<vmem>>, vector<1x192x128xf32>
    %62 = vector.shape_cast %61 : vector<1x192x128xf32> to vector<192x128xf32>
    %cst_32 = arith.constant dense<0.000000e+00> : vector<64x128xf32>
    %63 = tpu.matmul %60, %62, %cst_32 {dimension_numbers = #tpu.dot_dimension_numbers<[1], [0], [0], [1], [0, 0, 1, 1], [], []>} : vector<64x192xf32>, vector<192x128xf32>, vector<64x128xf32> -> vector<64x128xf32>
    %64 = arith.addf %55, %63 : vector<64x128xf32>
    %c1_33 = arith.constant 1 : index
    %c0_34 = arith.constant 0 : index
    %65 = vector.load %arg11[%c1_33, %c0_34] : memref<66x192xf32, #tpu.memory_space<vmem>>, vector<64x192xf32>
    %c1_35 = arith.constant 1 : index
    %c0_36 = arith.constant 0 : index
    %c0_37 = arith.constant 0 : index
    %66 = vector.load %arg5[%c1_35, %c0_36, %c0_37] : memref<3x192x128xf32, #tpu.memory_space<vmem>>, vector<1x192x128xf32>
    %67 = vector.shape_cast %66 : vector<1x192x128xf32> to vector<192x128xf32>
    %cst_38 = arith.constant dense<0.000000e+00> : vector<64x128xf32>
    %68 = tpu.matmul %65, %67, %cst_38 {dimension_numbers = #tpu.dot_dimension_numbers<[1], [0], [0], [1], [0, 0, 1, 1], [], []>} : vector<64x192xf32>, vector<192x128xf32>, vector<64x128xf32> -> vector<64x128xf32>
    %69 = arith.addf %64, %68 : vector<64x128xf32>
    %c2 = arith.constant 2 : index
    %c0_39 = arith.constant 0 : index
    %70 = vector.load %arg11[%c2, %c0_39] : memref<66x192xf32, #tpu.memory_space<vmem>>, vector<64x192xf32>
    %cst_40 = arith.constant 0.000000e+00 : f32
    %71 = vector.shape_cast %38 : vector<64x1xi1> to vector<64x1xi1>
    %72 = vector.broadcast %71 : vector<64x1xi1> to vector<64x192xi1>
    %73 = vector.broadcast %cst_40 : f32 to vector<64x192xf32>
    %74 = arith.select %72, %70, %73 : vector<64x192xi1>, vector<64x192xf32>
    %c2_41 = arith.constant 2 : index
    %c0_42 = arith.constant 0 : index
    %c0_43 = arith.constant 0 : index
    %75 = vector.load %arg5[%c2_41, %c0_42, %c0_43] : memref<3x192x128xf32, #tpu.memory_space<vmem>>, vector<1x192x128xf32>
    %76 = vector.shape_cast %75 : vector<1x192x128xf32> to vector<192x128xf32>
    %cst_44 = arith.constant dense<0.000000e+00> : vector<64x128xf32>
    %77 = tpu.matmul %74, %76, %cst_44 {dimension_numbers = #tpu.dot_dimension_numbers<[1], [0], [0], [1], [0, 0, 1, 1], [], []>} : vector<64x192xf32>, vector<192x128xf32>, vector<64x128xf32> -> vector<64x128xf32>
    %78 = arith.addf %69, %77 : vector<64x128xf32>
    %cst_45 = arith.constant 0.000000e+00 : f32
    %79 = vector.broadcast %cst_45 : f32 to vector<64x128xf32>
    %80 = arith.maximumf %78, %79 : vector<64x128xf32>
    %c1_46 = arith.constant 1 : index
    %c0_47 = arith.constant 0 : index
    %81 = vector.load %arg12[%c1_46, %c0_47] : memref<66x128xf32, #tpu.memory_space<vmem>>, vector<64x128xf32>
    tpu.vector_store %arg12[%c1_46, %c0_47], %80 {strides = array<i32>} : memref<66x128xf32, #tpu.memory_space<vmem>>, vector<64x128xf32>,
    %c0_48 = arith.constant 0 : index
    %c0_49 = arith.constant 0 : index
    %82 = vector.load %arg9[%c0_48, %c0_49] : memref<1x128xf32, #tpu.memory_space<vmem>>, vector<1x128xf32>
    %c1_50 = arith.constant 1 : index
    %c0_51 = arith.constant 0 : index
    %83 = vector.load %arg11[%c1_50, %c0_51] : memref<66x192xf32, #tpu.memory_space<vmem>>, vector<64x192xf32>
    %c0_52 = arith.constant 0 : index
    %c0_53 = arith.constant 0 : index
    %84 = vector.load %arg6[%c0_52, %c0_53] : memref<192x128xf32, #tpu.memory_space<vmem>>, vector<192x128xf32>
    %cst_54 = arith.constant dense<0.000000e+00> : vector<64x128xf32>
    %85 = tpu.matmul %83, %84, %cst_54 {dimension_numbers = #tpu.dot_dimension_numbers<[1], [0], [0], [1], [0, 0, 1, 1], [], []>} : vector<64x192xf32>, vector<192x128xf32>, vector<64x128xf32> -> vector<64x128xf32>
    %86 = vector.broadcast %82 : vector<1x128xf32> to vector<64x128xf32>
    %87 = arith.addf %86, %85 : vector<64x128xf32>
    %c0_55 = arith.constant 0 : index
    %c0_56 = arith.constant 0 : index
    %88 = vector.load %arg12[%c0_55, %c0_56] : memref<66x128xf32, #tpu.memory_space<vmem>>, vector<64x128xf32>
    %cst_57 = arith.constant 0.000000e+00 : f32
    %89 = vector.shape_cast %36 : vector<64x1xi1> to vector<64x1xi1>
    %90 = vector.broadcast %89 : vector<64x1xi1> to vector<64x128xi1>
    %91 = vector.broadcast %cst_57 : f32 to vector<64x128xf32>
    %92 = arith.select %90, %88, %91 : vector<64x128xi1>, vector<64x128xf32>
    %c0_58 = arith.constant 0 : index
    %c0_59 = arith.constant 0 : index
    %c0_60 = arith.constant 0 : index
    %93 = vector.load %arg7[%c0_58, %c0_59, %c0_60] : memref<3x128x128xf32, #tpu.memory_space<vmem>>, vector<1x128x128xf32>
    %94 = vector.shape_cast %93 : vector<1x128x128xf32> to vector<128x128xf32>
    %cst_61 = arith.constant dense<0.000000e+00> : vector<64x128xf32>
    %95 = tpu.matmul %92, %94, %cst_61 {dimension_numbers = #tpu.dot_dimension_numbers<[1], [0], [0], [1], [0, 0, 1, 1], [], []>} : vector<64x128xf32>, vector<128x128xf32>, vector<64x128xf32> -> vector<64x128xf32>
    %96 = arith.addf %87, %95 : vector<64x128xf32>
    %c1_62 = arith.constant 1 : index
    %c0_63 = arith.constant 0 : index
    %97 = vector.load %arg12[%c1_62, %c0_63] : memref<66x128xf32, #tpu.memory_space<vmem>>, vector<64x128xf32>
    %c1_64 = arith.constant 1 : index
    %c0_65 = arith.constant 0 : index
    %c0_66 = arith.constant 0 : index
    %98 = vector.load %arg7[%c1_64, %c0_65, %c0_66] : memref<3x128x128xf32, #tpu.memory_space<vmem>>, vector<1x128x128xf32>
    %99 = vector.shape_cast %98 : vector<1x128x128xf32> to vector<128x128xf32>
    %cst_67 = arith.constant dense<0.000000e+00> : vector<64x128xf32>
    %100 = tpu.matmul %97, %99, %cst_67 {dimension_numbers = #tpu.dot_dimension_numbers<[1], [0], [0], [1], [0, 0, 1, 1], [], []>} : vector<64x128xf32>, vector<128x128xf32>, vector<64x128xf32> -> vector<64x128xf32>
    %101 = arith.addf %96, %100 : vector<64x128xf32>
    %c2_68 = arith.constant 2 : index
    %c0_69 = arith.constant 0 : index
    %102 = vector.load %arg12[%c2_68, %c0_69] : memref<66x128xf32, #tpu.memory_space<vmem>>, vector<64x128xf32>
    %cst_70 = arith.constant 0.000000e+00 : f32
    %103 = vector.shape_cast %38 : vector<64x1xi1> to vector<64x1xi1>
    %104 = vector.broadcast %103 : vector<64x1xi1> to vector<64x128xi1>
    %105 = vector.broadcast %cst_70 : f32 to vector<64x128xf32>
    %106 = arith.select %104, %102, %105 : vector<64x128xi1>, vector<64x128xf32>
    %c2_71 = arith.constant 2 : index
    %c0_72 = arith.constant 0 : index
    %c0_73 = arith.constant 0 : index
    %107 = vector.load %arg7[%c2_71, %c0_72, %c0_73] : memref<3x128x128xf32, #tpu.memory_space<vmem>>, vector<1x128x128xf32>
    %108 = vector.shape_cast %107 : vector<1x128x128xf32> to vector<128x128xf32>
    %cst_74 = arith.constant dense<0.000000e+00> : vector<64x128xf32>
    %109 = tpu.matmul %106, %108, %cst_74 {dimension_numbers = #tpu.dot_dimension_numbers<[1], [0], [0], [1], [0, 0, 1, 1], [], []>} : vector<64x128xf32>, vector<128x128xf32>, vector<64x128xf32> -> vector<64x128xf32>
    %110 = arith.addf %101, %109 : vector<64x128xf32>
    %c0_75 = arith.constant 0 : index
    %c0_76 = arith.constant 0 : index
    %111 = vector.load %arg10[%c0_75, %c0_76] : memref<64x128xf32, #tpu.memory_space<vmem>>, vector<64x128xf32>
    tpu.vector_store %arg10[%c0_75, %c0_76], %110 {strides = array<i32>} : memref<64x128xf32, #tpu.memory_space<vmem>>, vector<64x128xf32>,
    return
  }
  func.func @transform_0(%arg0: i32) -> (i32, i32) {
    %c0_i32 = arith.constant 0 : i32
    %c0_i32_0 = arith.constant 0 : i32
    return %arg0, %c0_i32 : i32, i32
  }
  func.func @transform_1(%arg0: i32) -> (i32, i32) {
    %c0_i32 = arith.constant 0 : i32
    %c0_i32_0 = arith.constant 0 : i32
    return %arg0, %c0_i32 : i32, i32
  }
  func.func @transform_2(%arg0: i32) -> (i32, i32) {
    %c0_i32 = arith.constant 0 : i32
    %c0_i32_0 = arith.constant 0 : i32
    return %arg0, %c0_i32 : i32, i32
  }
  func.func @transform_3(%arg0: i32) -> (i32, i32, i32) {
    %c0_i32 = arith.constant 0 : i32
    %c0_i32_0 = arith.constant 0 : i32
    %c0_i32_1 = arith.constant 0 : i32
    %c0_i32_2 = arith.constant 0 : i32
    return %c0_i32, %c0_i32_0, %c0_i32_1 : i32, i32, i32
  }
  func.func @transform_4(%arg0: i32) -> (i32, i32, i32) {
    %c0_i32 = arith.constant 0 : i32
    %c0_i32_0 = arith.constant 0 : i32
    %c0_i32_1 = arith.constant 0 : i32
    %c0_i32_2 = arith.constant 0 : i32
    return %c0_i32, %c0_i32_0, %c0_i32_1 : i32, i32, i32
  }
  func.func @transform_5(%arg0: i32) -> (i32, i32) {
    %c0_i32 = arith.constant 0 : i32
    %c0_i32_0 = arith.constant 0 : i32
    %c0_i32_1 = arith.constant 0 : i32
    return %c0_i32, %c0_i32_0 : i32, i32
  }
  func.func @transform_6(%arg0: i32) -> (i32, i32, i32) {
    %c0_i32 = arith.constant 0 : i32
    %c0_i32_0 = arith.constant 0 : i32
    %c0_i32_1 = arith.constant 0 : i32
    %c0_i32_2 = arith.constant 0 : i32
    return %c0_i32, %c0_i32_0, %c0_i32_1 : i32, i32, i32
  }
  func.func @transform_7(%arg0: i32) -> (i32, i32) {
    %c0_i32 = arith.constant 0 : i32
    %c0_i32_0 = arith.constant 0 : i32
    %c0_i32_1 = arith.constant 0 : i32
    return %c0_i32, %c0_i32_0 : i32, i32
  }
  func.func @transform_8(%arg0: i32) -> (i32, i32) {
    %c0_i32 = arith.constant 0 : i32
    %c0_i32_0 = arith.constant 0 : i32
    %c0_i32_1 = arith.constant 0 : i32
    return %c0_i32, %c0_i32_0 : i32, i32
  }
  func.func @transform_9(%arg0: i32) -> (i32, i32) {
    %c0_i32 = arith.constant 0 : i32
    %c0_i32_0 = arith.constant 0 : i32
    return %arg0, %c0_i32 : i32, i32
  }
}

</mosaic_0001>

<bundles_post_ra>
// kernel: tile.17
= control target key start
LH: loop header
LB: loop body
LE: loop exit
PB: predicated region body
PF: predicated region fallthrough
CT: control target
= control target key end

     0   :  { %vm6_vm0 = vcmask 1043458   ;;  %vm10_vm1 = vcmask 1045508   ;;  %vm14_vm2 = vcmask 1047558   ;;  %s19_s6 = smov 3  ;;  %s22_s7 = smov 12  ;;  %vm16_vm3 = vcmask 64512   ;;  %s736_s0 = inlined_call_operand.vmem [shape: f32[8,16,8], index: 0, kind: input, shape index: {}]   ;;  %s737_s1 = inlined_call_operand.vmem [shape: f32[8,128], index: 1, kind: output, shape index: {}]  }
   0x1   :  { %v348_v0 = vld [vmem:[%s736_s0 + $0xf] ss:$16 sm:%s19_s6]   ;;  %s27_s12 = smov 48  ;;  %s32_s13 = smov 192  ;;  %vm38_vm4 = vcmask 1048512   ;;  %vm60_vm5 = vcmask 982912  }
   0x2   :  { %v349_v1 = vld [vmem:[%s736_s0 + $0xf] ss:$16 sm:%s22_s7]   ;;  %s63_s18 = smov 3  ;;  %s66_s21 = smov 12  ;;  %vm82_vm6 = vcmask 917312   ;;  %vm104_vm7 = vcmask 851712  }
   0x3   :  { %v25_v2 = vsel %vm6_vm0, %v349_v1, %v348_v0  ;;  %v350_v3 = vld [vmem:[%s736_s0 + $0xf] ss:$16 sm:%s27_s12]   ;;  %v356_v6 = vld [vmem:[%s736_s0 + $0xd] ss:$16 sm:%s63_s18]   ;;  %s71_s22 = smov 48  ;;  %s76_s27 = smov 192 }
   0x4   :  { %v351_v4 = vld [vmem:[%s736_s0 + $0xf] ss:$16 sm:%s32_s13]   ;;  %v30_v5 = vsel %vm10_vm1, %v350_v3, %v25_v2  ;;  %v357_v8 = vld [vmem:[%s736_s0 + $0xd] ss:$16 sm:%s66_s21]   ;;  %s423_s28 = smov 120   ;;  %s41_s2 = smov 3 }
   0x5   :  { %v35_v7 = vsel %vm14_vm2, %v351_v4, %v30_v5  ;;  %v358_v9 = vld [vmem:[%s736_s0 + $0xd] ss:$16 sm:%s71_s22]   ;;  %v69_v10 = vsel %vm6_vm0, %v357_v8, %v356_v6  ;;  %s44_s3 = smov 12  ;;  %v352_v13 = vld [vmem:[%s736_s0 + $0xe] ss:$16 sm:%s41_s2]   ;;  %s49_s8 = smov 48 }
   0x6   :  { %36 = vrot.lane.b32.xlu0 %v35_v7, %s423_s28  ;;  %v359_v11 = vld [vmem:[%s736_s0 + $0xd] ss:$16 sm:%s76_s27]   ;;  %v74_v12 = vsel %vm10_vm1, %v358_v9, %v69_v10  ;;  %s54_s9 = smov 192  ;;  %s85_s14 = smov 3  ;;  %vm126_vm8 = vcmask 786112   ;;  %vm148_vm9 = vcmask 720512  }
   0x7   :  { %v353_v14 = vld [vmem:[%s736_s0 + $0xe] ss:$16 sm:%s44_s3]   ;;  %v79_v15 = vsel %vm14_vm2, %v359_v11, %v74_v12  ;;  %s424_s15 = smov 104   ;;  %v360_v20 = vld [vmem:[%s736_s0 + $0xc] ss:$16 sm:%s85_s14]   ;;  %s88_s18 = smov 12 }
   0x8   :  { %v47_v16 = vsel %vm6_vm0, %v353_v14, %v352_v13  ;;  %v354_v17 = vld [vmem:[%s736_s0 + $0xe] ss:$16 sm:%s49_s8]   ;;  %80 = vrot.lane.b32.xlu1 %v79_v15, %s424_s15  ;;  %s93_s19 = smov 48  ;;  %s98_s24 = smov 192  ;;  %vm170_vm10 = vcmask 654912   ;;  %vm192_vm11 = vcmask 589312  }
   0x9   :  { %v355_v18 = vld [vmem:[%s736_s0 + $0xe] ss:$16 sm:%s54_s9]   ;;  %v52_v19 = vsel %vm10_vm1, %v354_v17, %v47_v16  ;;  %v361_v22 = vld [vmem:[%s736_s0 + $0xc] ss:$16 sm:%s88_s18]   ;;  %s425_s25 = smov 112   ;;  %s107_s28 = smov 3 }
   0xa   :  { %v57_v21 = vsel %vm14_vm2, %v355_v18, %v52_v19  ;;  %v362_v23 = vld [vmem:[%s736_s0 + $0xc] ss:$16 sm:%s93_s19]   ;;  %v91_v24 = vsel %vm6_vm0, %v361_v22, %v360_v20  ;;  %s110_s29 = smov 12  ;;  %v364_v27 = vld [vmem:[%s736_s0 + $0xb] ss:$16 sm:%s107_s28]   ;;  %s115_s5 = smov 48 }
   0xb   :  { %58 = vrot.lane.b32.xlu0 %v57_v21, %s425_s25  ;;  %v363_v25 = vld [vmem:[%s736_s0 + $0xc] ss:$16 sm:%s98_s24]   ;;  %v96_v26 = vsel %vm10_vm1, %v362_v23, %v91_v24  ;;  %s120_s6 = smov 192  ;;  %s129_s11 = smov 3  ;;  %vm214_vm12 = vcmask 523712   ;;  %vm236_vm13 = vcmask 458112  }
   0xc   :  { %v365_v28 = vld [vmem:[%s736_s0 + $0xb] ss:$16 sm:%s110_s29]   ;;  %v101_v29 = vsel %vm14_vm2, %v363_v25, %v96_v26  ;;  %s426_s12 = smov 96   ;;  %v368_v34 = vld [vmem:[%s736_s0 + $0xa] ss:$16 sm:%s129_s11]   ;;  %s132_s15 = smov 12 }
   0xd   :  { %v113_v30 = vsel %vm6_vm0, %v365_v28, %v364_v27  ;;  %v366_v31 = vld [vmem:[%s736_s0 + $0xb] ss:$16 sm:%s115_s5]   ;;  %102 = vrot.lane.b32.xlu1 %v101_v29, %s426_s12  ;;  %s137_s16 = smov 48  ;;  %s142_s21 = smov 192  ;;  %vm258_vm14 = vcmask 392512   ;;  %vm280_vm15 = vcmask 326912  }
   0xe   :  { %v367_v32 = vld [vmem:[%s736_s0 + $0xb] ss:$16 sm:%s120_s6]   ;;  %v118_v33 = vsel %vm10_vm1, %v366_v31, %v113_v30  ;;  %v369_v36 = vld [vmem:[%s736_s0 + $0xa] ss:$16 sm:%s132_s15]   ;;  %s427_s22 = smov 88   ;;  %s151_s25 = smov 3 }
   0xf   :  { %v123_v35 = vsel %vm14_vm2, %v367_v32, %v118_v33  ;;  %v370_v37 = vld [vmem:[%s736_s0 + $0xa] ss:$16 sm:%s137_s16]   ;;  %v135_v38 = vsel %vm6_vm0, %v369_v36, %v368_v34  ;;  %s154_s26 = smov 12  ;;  %v372_v41 = vld [vmem:[%s736_s0 + $0x9] ss:$16 sm:%s151_s25]   ;;  %s159_s2 = smov 48 }
  0x10   :  { %124 = vrot.lane.b32.xlu0 %v123_v35, %s427_s22  ;;  %v371_v39 = vld [vmem:[%s736_s0 + $0xa] ss:$16 sm:%s142_s21]   ;;  %v140_v40 = vsel %vm10_vm1, %v370_v37, %v135_v38  ;;  %s164_s3 = smov 192  ;;  %s173_s8 = smov 3 }
  0x11   :  { %v373_v42 = vld [vmem:[%s736_s0 + $0x9] ss:$16 sm:%s154_s26]   ;;  %v145_v43 = vsel %vm14_vm2, %v371_v39, %v140_v40  ;;  %s428_s9 = smov 80   ;;  %v376_v48 = vld [vmem:[%s736_s0 + $0x8] ss:$16 sm:%s173_s8]   ;;  %s176_s12 = smov 12 }
  0x12   :  { %v157_v44 = vsel %vm6_vm0, %v373_v42, %v372_v41  ;;  %v374_v45 = vld [vmem:[%s736_s0 + $0x9] ss:$16 sm:%s159_s2]   ;;  %146 = vrot.lane.b32.xlu1 %v145_v43, %s428_s9  ;;  %s181_s13 = smov 48  ;;  %s186_s18 = smov 192 }
  0x13   :  { %v375_v46 = vld [vmem:[%s736_s0 + $0x9] ss:$16 sm:%s164_s3]   ;;  %v162_v47 = vsel %vm10_vm1, %v374_v45, %v157_v44  ;;  %v377_v50 = vld [vmem:[%s736_s0 + $0x8] ss:$16 sm:%s176_s12]   ;;  %s429_s19 = smov 72   ;;  %s195_s22 = smov 3 }
  0x14   :  { %v167_v49 = vsel %vm14_vm2, %v375_v46, %v162_v47  ;;  %v378_v51 = vld [vmem:[%s736_s0 + $0x8] ss:$16 sm:%s181_s13]   ;;  %v179_v52 = vsel %vm6_vm0, %v377_v50, %v376_v48  ;;  %s198_s23 = smov 12  ;;  %v380_v55 = vld [vmem:[%s736_s0 + $0x7] ss:$16 sm:%s195_s22]   ;;  %s203_s28 = smov 48 }
  0x15   :  { %168 = vrot.lane.b32.xlu0 %v167_v49, %s429_s19  ;;  %v379_v53 = vld [vmem:[%s736_s0 + $0x8] ss:$16 sm:%s186_s18]   ;;  %v184_v54 = vsel %vm10_vm1, %v378_v51, %v179_v52  ;;  %s208_s29 = smov 192  ;;  %s217_s5 = smov 3 }
  0x16   :  { %v381_v56 = vld [vmem:[%s736_s0 + $0x7] ss:$16 sm:%s198_s23]   ;;  %v189_v57 = vsel %vm14_vm2, %v379_v53, %v184_v54  ;;  %s430_s6 = smov 64   ;;  %v384_v62 = vld [vmem:[%s736_s0 + $0x6] ss:$16 sm:%s217_s5]   ;;  %s220_s9 = smov 12 }
  0x17   :  { %v201_v58 = vsel %vm6_vm0, %v381_v56, %v380_v55  ;;  %v382_v59 = vld [vmem:[%s736_s0 + $0x7] ss:$16 sm:%s203_s28]   ;;  %190 = vrot.lane.b32.xlu1 %v189_v57, %s430_s6  ;;  %s225_s10 = smov 48  ;;  %s230_s15 = smov 192 }
  0x18   :  { %v383_v60 = vld [vmem:[%s736_s0 + $0x7] ss:$16 sm:%s208_s29]   ;;  %v206_v61 = vsel %vm10_vm1, %v382_v59, %v201_v58  ;;  %v385_v0 = vld [vmem:[%s736_s0 + $0x6] ss:$16 sm:%s220_s9]   ;;  %s431_s16 = smov 56   ;;  %s239_s19 = smov 3 }
  0x19   :  { %v211_v63 = vsel %vm14_vm2, %v383_v60, %v206_v61  ;;  %v386_v1 = vld [vmem:[%s736_s0 + $0x6] ss:$16 sm:%s225_s10]   ;;  %v223_v2 = vsel %vm6_vm0, %v385_v0, %v384_v62  ;;  %s242_s20 = smov 12  ;;  %v388_v5 = vld [vmem:[%s736_s0 + $0x5] ss:$16 sm:%s239_s19]   ;;  %s247_s25 = smov 48 }
  0x1a   :  { %212 = vrot.lane.b32.xlu0 %v211_v63, %s431_s16  ;;  %v387_v3 = vld [vmem:[%s736_s0 + $0x6] ss:$16 sm:%s230_s15]   ;;  %v228_v4 = vsel %vm10_vm1, %v386_v1, %v223_v2  ;;  %s252_s26 = smov 192  ;;  %s261_s2 = smov 3 }
  0x1b   :  { %v389_v6 = vld [vmem:[%s736_s0 + $0x5] ss:$16 sm:%s242_s20]   ;;  %v233_v7 = vsel %vm14_vm2, %v387_v3, %v228_v4  ;;  %s432_s3 = smov 48   ;;  %v392_v12 = vld [vmem:[%s736_s0 + $0x4] ss:$16 sm:%s261_s2]   ;;  %s264_s6 = smov 12 }
  0x1c   :  { %v245_v8 = vsel %vm6_vm0, %v389_v6, %v388_v5  ;;  %v390_v9 = vld [vmem:[%s736_s0 + $0x5] ss:$16 sm:%s247_s25]   ;;  %234 = vrot.lane.b32.xlu1 %v233_v7, %s432_s3  ;;  %s269_s7 = smov 48  ;;  %s274_s12 = smov 192 }
  0x1d   :  { %v391_v10 = vld [vmem:[%s736_s0 + $0x5] ss:$16 sm:%s252_s26]   ;;  %v250_v11 = vsel %vm10_vm1, %v390_v9, %v245_v8  ;;  %v393_v14 = vld [vmem:[%s736_s0 + $0x4] ss:$16 sm:%s264_s6]   ;;  %s433_s13 = smov 40   ;;  %s283_s16 = smov 3 }
  0x1e   :  { %v255_v13 = vsel %vm14_vm2, %v391_v10, %v250_v11  ;;  %v394_v15 = vld [vmem:[%s736_s0 + $0x4] ss:$16 sm:%s269_s7]   ;;  %v267_v16 = vsel %vm6_vm0, %v393_v14, %v392_v12  ;;  %s286_s17 = smov 12  ;;  %v396_v19 = vld [vmem:[%s736_s0 + $0x3] ss:$16 sm:%s283_s16]   ;;  %s291_s22 = smov 48 }
  0x1f   :  { %256 = vrot.lane.b32.xlu0 %v255_v13, %s433_s13  ;;  %v395_v17 = vld [vmem:[%s736_s0 + $0x4] ss:$16 sm:%s274_s12]   ;;  %v272_v18 = vsel %vm10_vm1, %v394_v15, %v267_v16  ;;  %s296_s23 = smov 192  ;;  %s305_s28 = smov 3 }
  0x20   :  { %v397_v20 = vld [vmem:[%s736_s0 + $0x3] ss:$16 sm:%s286_s17]   ;;  %v277_v21 = vsel %vm14_vm2, %v395_v17, %v272_v18  ;;  %s434_s29 = smov 32   ;;  %v400_v26 = vld [vmem:[%s736_s0 + $0x2] ss:$16 sm:%s305_s28]   ;;  %s308_s3 = smov 12 }
  0x21   :  { %v289_v22 = vsel %vm6_vm0, %v397_v20, %v396_v19  ;;  %v398_v23 = vld [vmem:[%s736_s0 + $0x3] ss:$16 sm:%s291_s22]   ;;  %278 = vrot.lane.b32.xlu1 %v277_v21, %s434_s29  ;;  %s313_s4 = smov 48  ;;  %s318_s9 = smov 192 }
  0x22   :  { %v399_v24 = vld [vmem:[%s736_s0 + $0x3] ss:$16 sm:%s296_s23]   ;;  %v294_v25 = vsel %vm10_vm1, %v398_v23, %v289_v22  ;;  %v401_v28 = vld [vmem:[%s736_s0 + $0x2] ss:$16 sm:%s308_s3]   ;;  %s435_s10 = smov 24   ;;  %s327_s13 = smov 3 }
  0x23   :  { %v299_v27 = vsel %vm14_vm2, %v399_v24, %v294_v25  ;;  %v402_v29 = vld [vmem:[%s736_s0 + $0x2] ss:$16 sm:%s313_s4]   ;;  %v311_v30 = vsel %vm6_vm0, %v401_v28, %v400_v26  ;;  %s330_s14 = smov 12  ;;  %v404_v33 = vld [vmem:[%s736_s0 + $0x1] ss:$16 sm:%s327_s13]   ;;  %s335_s19 = smov 48 }
  0x24   :  { %300 = vrot.lane.b32.xlu0 %v299_v27, %s435_s10  ;;  %v403_v31 = vld [vmem:[%s736_s0 + $0x2] ss:$16 sm:%s318_s9]   ;;  %v316_v32 = vsel %vm10_vm1, %v402_v29, %v311_v30  ;;  %s340_s20 = smov 192  ;;  %s2_s25 = smov 3 }
  0x25   :  { %v405_v34 = vld [vmem:[%s736_s0 + $0x1] ss:$16 sm:%s330_s14]   ;;  %v321_v35 = vsel %vm14_vm2, %v403_v31, %v316_v32  ;;  %s436_s26 = smov 16   ;;  %s4_s27 = smov 12  ;;  %v3_v40 = vld [vmem:[%s736_s0] ss:$16 sm:%s2_s25]  }
  0x26   :  { %v333_v36 = vsel %vm6_vm0, %v405_v34, %v404_v33  ;;  %v406_v37 = vld [vmem:[%s736_s0 + $0x1] ss:$16 sm:%s335_s19]   ;;  %322 = vrot.lane.b32.xlu1 %v321_v35, %s436_s26  ;;  %s8_s28 = smov 48  ;;  %s12_s2 = smov 192 }
  0x27   :  { %v407_v38 = vld [vmem:[%s736_s0 + $0x1] ss:$16 sm:%s340_s20]   ;;  %v338_v39 = vsel %vm10_vm1, %v406_v37, %v333_v36  ;;  %v5_v42 = vld [vmem:[%s736_s0] ss:$16 sm:%s4_s27]   ;;  %s437_s7 = smov 8  }
  0x28   :  { %v343_v41 = vsel %vm14_vm2, %v407_v38, %v338_v39  ;;  %v9_v43 = vld [vmem:[%s736_s0] ss:$16 sm:%s8_s28]   ;;  %v7_v44 = vsel %vm6_vm0, %v5_v42, %v3_v40  ;;  %vm302_vm0 = vcmask 261312  }
  0x29   :  { %344 = vrot.lane.b32.xlu0 %v343_v41, %s437_s7  ;;  %v13_v45 = vld [vmem:[%s736_s0] ss:$16 sm:%s12_s2]   ;;  %v11_v46 = vsel %vm10_vm1, %v9_v43, %v7_v44  ;;  %vm324_vm1 = vcmask 195712  }
  0x2a   :  { %v15_v47 = vsel %vm14_vm2, %v13_v45, %v11_v46  ;;  %vm346_vm2 = vcmask 130112  }
  0x2b   :  { %17 = vst.msk [vmem:[%s737_s1] sm:$0xff] %vm16_vm3, %v15_v47  }
  0x78   :  { %v37_v48 = vpop.permute.xlu0 %36  }
  0x79   :  { %39 = vst.msk [vmem:[%s737_s1] sm:$0xff] %vm38_vm4, %v37_v48  }
  0x7a   :  { %v81_v49 = vpop.permute.xlu1 %80  }
  0x7d   :  { %v59_v50 = vpop.permute.xlu0 %58  }
  0x7e   :  { %61 = vst.msk [vmem:[%s737_s1] sm:$0xff] %vm60_vm5, %v59_v50  }
  0x7f   :  { %83 = vst.msk [vmem:[%s737_s1] sm:$0xff] %vm82_vm6, %v81_v49   ;;  %v103_v51 = vpop.permute.xlu1 %102  }
  0x80   :  { %105 = vst.msk [vmem:[%s737_s1] sm:$0xff] %vm104_vm7, %v103_v51  }
  0x82   :  { %v125_v52 = vpop.permute.xlu0 %124  }
  0x83   :  { %127 = vst.msk [vmem:[%s737_s1] sm:$0xff] %vm126_vm8, %v125_v52  }
  0x84   :  { %v147_v53 = vpop.permute.xlu1 %146  }
  0x85   :  { %149 = vst.msk [vmem:[%s737_s1] sm:$0xff] %vm148_vm9, %v147_v53  }
  0x87   :  { %v169_v54 = vpop.permute.xlu0 %168  }
  0x88   :  { %171 = vst.msk [vmem:[%s737_s1] sm:$0xff] %vm170_vm10, %v169_v54  }
  0x89   :  { %v191_v55 = vpop.permute.xlu1 %190  }
  0x8a   :  { %193 = vst.msk [vmem:[%s737_s1] sm:$0xff] %vm192_vm11, %v191_v55  }
  0x8c   :  { %v213_v56 = vpop.permute.xlu0 %212  }
  0x8d   :  { %215 = vst.msk [vmem:[%s737_s1] sm:$0xff] %vm214_vm12, %v213_v56  }
  0x8e   :  { %v235_v57 = vpop.permute.xlu1 %234  }
  0x8f   :  { %237 = vst.msk [vmem:[%s737_s1] sm:$0xff] %vm236_vm13, %v235_v57  }
  0x91   :  { %v257_v58 = vpop.permute.xlu0 %256  }
  0x92   :  { %259 = vst.msk [vmem:[%s737_s1] sm:$0xff] %vm258_vm14, %v257_v58  }
  0x93   :  { %v279_v59 = vpop.permute.xlu1 %278  }
  0x94   :  { %281 = vst.msk [vmem:[%s737_s1] sm:$0xff] %vm280_vm15, %v279_v59  }
  0x96   :  { %v301_v60 = vpop.permute.xlu0 %300  }
  0x97   :  { %303 = vst.msk [vmem:[%s737_s1] sm:$0xff] %vm302_vm0, %v301_v60  }
  0x98   :  { %v323_v61 = vpop.permute.xlu1 %322  }
  0x99   :  { %325 = vst.msk [vmem:[%s737_s1] sm:$0xff] %vm324_vm1, %v323_v61  }
  0x9b   :  { %v345_v62 = vpop.permute.xlu0 %344  }
  0x9c   :  { %347 = vst.msk [vmem:[%s737_s1] sm:$0xff] %vm346_vm2, %v345_v62  }

// kernel: upblock_forward.1
= control target key start
LH: loop header
LB: loop body
LE: loop exit
PB: predicated region body
PF: predicated region fallthrough
CT: control target
= control target key end

     0   :  { %s3312_s30 = smov 0   ;;  %s4411_s0 = inlined_call_operand.vmem [shape: f32[128,64], index: 0, kind: input, shape index: {}]   ;;  %s4412_s1 = inlined_call_operand.vmem [shape: f32[128,64], index: 1, kind: input, shape index: {}]   ;;  %s4413_s2 = inlined_call_operand.vmem [shape: f32[128,128], index: 2, kind: input, shape index: {}]   ;;  %s4414_s3 = inlined_call_operand.vmem [shape: f32[2,64,128], index: 3, kind: input, shape index: {}]   ;;  %s4415_s4 = inlined_call_operand.vmem [shape: f32[3,192,128], index: 4, kind: input, shape index: {}]   ;;  %s4416_s5 = inlined_call_operand.vmem [shape: f32[192,128], index: 5, kind: input, shape index: {}]   ;;  %s4417_s6 = inlined_call_operand.vmem [shape: f32[3,128,128], index: 6, kind: input, shape index: {}]   ;;  %s4418_s7 = inlined_call_operand.vmem [shape: f32[1,128], index: 7, kind: input, shape index: {}]   ;;  %s4419_s8 = inlined_call_operand.vmem [shape: f32[1,128], index: 8, kind: input, shape index: {}]   ;;  %s4420_s9 = inlined_call_operand.vmem [shape: f32[128,128], index: 9, kind: output, shape index: {}]  }
   0x1 LB: > { %s2471_s10 = sadd.s32 4294967295, %s3259_s30   ;;  %p2475_p0 = scmp.ge.s32.totalorder %s3259_s30, 1  ;;  %s3259_s30 = sphi %s3312_s30, %s19_s30  }
   0x2   : > { %p310_p1 = scmp.lt.s32.totalorder %s3259_s30, 3 }
   0x4   : > { %p311_p2 = pnand %p2475_p0, %p310_p1 }
   0x5   : > { %v613_v0 = vld [vmem:[%s4414_s3] sm:$0xff] (!%p311_p2)  ;;  %v614_v1 = vld [vmem:[%s4414_s3 + $0x8] sm:$0xff] (!%p311_p2)  ;;  %s2476_s17 = sshll.u32 (!%p311_p2), %s2471_s10, 3  ;;  %v615_v5 = vld [vmem:[%s4414_s3 + $0x10] sm:$0xff] (!%p311_p2)  ;;  %vm621_vm0 = vcmask (!%p311_p2), 523264   ;;  %v3261_v31 = vmov (!%p311_p2), 0.0|0.0  }
   0x6   : > { %314 = sbr.rel (%p311_p2) target bundleno = 867 (0x363), region = 56  ;;  %v2492_v2 = vld [vmem:[%s4414_s3 + $0x40] sm:$0xff] (!%p311_p2)  ;;  %v2932_v3 = vpack.c.bf16 (!%p311_p2), %v614_v1, %v613_v0  ;;  %v2493_v4 = vld [vmem:[%s4414_s3 + $0x48] sm:$0xff] (!%p311_p2)  ;;  %v616_v6 = vld [vmem:[%s4414_s3 + $0x18] sm:$0xff] (!%p311_p2)  ;;  %p357_p3 = scmp.lt.s32.totalorder (!%p311_p2), %s2476_s17, 15  ;;  %vm912_vm1 = vcmask (!%p311_p2), 1040384  }
   0x7   : > { %v2948_v7 = vpack.c.bf16 (!%p311_p2), %v2493_v4, %v2492_v2  ;;  %v2936_v8 = vpack.c.bf16 (!%p311_p2), %v616_v6, %v615_v5  ;;  %v2494_v9 = vld [vmem:[%s4414_s3 + $0x50] sm:$0xff] (!%p311_p2)  ;;  %v2495_v10 = vld [vmem:[%s4414_s3 + $0x58] sm:$0xff] (!%p311_p2)  ;;  %v617_v11 = vld [vmem:[%s4414_s3 + $0x20] sm:$0xff] (!%p311_p2)  ;;  %vm986_vm2 = vcmask (!%p311_p2), 523265   ;;  %vm1275_vm4 = vcmask (!%p311_p2), 1046528  }
   0x8   : > { %2933 = vmatprep.subr.bf16.mxu0 (!%p311_p2), %v2932_v3  ;;  %v2952_v12 = vpack.c.bf16 (!%p311_p2), %v2495_v10, %v2494_v9  ;;  %v618_v13 = vld [vmem:[%s4414_s3 + $0x28] sm:$0xff] (!%p311_p2)  ;;  %v2496_v14 = vld [vmem:[%s4414_s3 + $0x60] sm:$0xff] (!%p311_p2)  ;;  %v619_v18 = vld [vmem:[%s4414_s3 + $0x30] sm:$0xff] (!%p311_p2)  ;;  %vm995_vm5 = vcmask (!%p311_p2), 516096   ;;  %vm1471_vm13 = vcmask (!%p311_p2), 1045504  }
   0x9   : > { %v2497_v15 = vld [vmem:[%s4414_s3 + $0x68] sm:$0xff] (!%p311_p2)  ;;  %2949 = vmatprep.subr.bf16.mxu1 (!%p311_p2), %v2948_v7  ;;  %2935 = vmatpush3.bf16.msra.mxu0 (!%p311_p2), %v2932_v3  ;;  %v2940_v16 = vpack.c.bf16 (!%p311_p2), %v618_v13, %v617_v11  ;;  %v620_v19 = vld [vmem:[%s4414_s3 + $0x38] sm:$0xff] (!%p311_p2)  ;;  %v2498_v20 = vld [vmem:[%s4414_s3 + $0x70] sm:$0xff] (!%p311_p2) }
   0xa   : > { %2951 = vmatpush3.bf16.msra.mxu1 (!%p311_p2), %v2948_v7  ;;  %2937 = vmatprep.subr.bf16.mxu0 (!%p311_p2), %v2936_v8  ;;  %v2956_v17 = vpack.c.bf16 (!%p311_p2), %v2497_v15, %v2496_v14  ;;  %v2499_v21 = vld [vmem:[%s4414_s3 + $0x78] sm:$0xff] (!%p311_p2)  ;;  %v2944_v23 = vpack.c.bf16 (!%p311_p2), %v620_v19, %v619_v18  ;;  %v1053_v25 = vld [vmem:[%s4415_s4] sm:$0xff] (!%p311_p2)  ;;  %v1054_v26 = vld [vmem:[%s4415_s4 + $0x8] sm:$0xff] (!%p311_p2) }
   0xb   : > { %2953 = vmatprep.subr.bf16.mxu1 (!%p311_p2), %v2952_v12  ;;  %v2960_v24 = vpack.c.bf16 (!%p311_p2), %v2499_v21, %v2498_v20  ;;  %v1735_v27 = vld [vmem:[%s4416_s5] sm:$0xff] (!%p311_p2)  ;;  %v1736_v28 = vld [vmem:[%s4416_s5 + $0x8] sm:$0xff] (!%p311_p2)  ;;  %v2965_v32 = vpack.c.bf16 (!%p311_p2), %v1054_v26, %v1053_v25  ;;  %v1055_v33 = vld [vmem:[%s4415_s4 + $0x10] sm:$0xff] (!%p311_p2) }
   0xc   : > { %v1056_v34 = vld [vmem:[%s4415_s4 + $0x18] sm:$0xff] (!%p311_p2)  ;;  %v3073_v35 = vpack.c.bf16 (!%p311_p2), %v1736_v28, %v1735_v27  ;;  %v1737_v36 = vld [vmem:[%s4416_s5 + $0x10] sm:$0xff] (!%p311_p2)  ;;  %v1057_v41 = vld [vmem:[%s4415_s4 + $0x20] sm:$0xff] (!%p311_p2) }
   0xd   : > { %s4438_s17 = smov (!%p357_p3, %s2476_s17), 15  ;;  %2939 = vmatpush3.bf16.msra.mxu0 %v2936_v8  ;;  %v1738_v37 = vld [vmem:[%s4416_s5 + $0x18] sm:$0xff]  ;;  %v2968_v40 = vpack.c.bf16 %v1056_v34, %v1055_v33  ;;  %v1058_v42 = vld [vmem:[%s4415_s4 + $0x28] sm:$0xff]  ;;  %v1739_v44 = vld [vmem:[%s4416_s5 + $0x20] sm:$0xff] }
   0xe   : > { %s3356_s16 = sshll.u32 %s4438_s17, 3  ;;  %2955 = vmatpush3.bf16.msra.mxu1 %v2952_v12  ;;  %2941 = vmatprep.subr.bf16.mxu0 %v2940_v16  ;;  %v3076_v43 = vpack.c.bf16 %v1738_v37, %v1737_v36  ;;  %v1740_v45 = vld [vmem:[%s4416_s5 + $0x28] sm:$0xff]  ;;  %v2971_v48 = vpack.c.bf16 %v1058_v42, %v1057_v41  ;;  %v1059_v49 = vld [vmem:[%s4415_s4 + $0x30] sm:$0xff]  ;;  %v1060_v50 = vld [vmem:[%s4415_s4 + $0x38] sm:$0xff] }
   0xf   : > { %s3368_s24 = scalar_lea.vmem %s4411_s0, %s3356_s16  ;;  %2957 = vmatprep.subr.bf16.mxu1 %v2956_v17  ;;  %v3079_v51 = vpack.c.bf16 %v1740_v45, %v1739_v44  ;;  %v1741_v52 = vld [vmem:[%s4416_s5 + $0x30] sm:$0xff]  ;;  %v1742_v53 = vld [vmem:[%s4416_s5 + $0x38] sm:$0xff]  ;;  %v2974_v55 = vpack.c.bf16 %v1060_v50, %v1059_v49  ;;  %v1061_v56 = vld [vmem:[%s4415_s4 + $0x40] sm:$0xff]  ;;  %s3518_s20 = scalar_lea.vmem %s4412_s1, %s3356_s16 }
  0x10   : > { %v605_v22 = vld [vmem:[%s3368_s24] sm:$0xff]  ;;  %v606_v29 = vld [vmem:[%s3368_s24 + $0x8] sm:$0xff]  ;;  %v607_v30 = vld [vmem:[%s3368_s24 + $0x10] sm:$0xff]  ;;  %v3082_v58 = vpack.c.bf16 %v1742_v53, %v1741_v52  ;;  %s4232_s18 = scalar_lea.vmem %s4413_s2, %s3356_s16  ;;  %s378_s27 = scalar_lea.vmem %s4420_s9, %s3356_s16 }
  0x11   : > { %2760 = vmatprep.mubr.msk.f32.mxu0 %vm621_vm0, %v605_v22  ;;  %2788 = vmatprep.mubr.msk.f32.mxu1 %vm621_vm0, %v605_v22  ;;  %v608_v38 = vld [vmem:[%s3368_s24 + $0x18] sm:$0xff]  ;;  %v609_v39 = vld [vmem:[%s3368_s24 + $0x20] sm:$0xff]  ;;  %v610_v46 = vld [vmem:[%s3368_s24 + $0x28] sm:$0xff] }
  0x12   : > { %2943 = vmatpush3.bf16.msra.mxu0 %v2940_v16  ;;  %2959 = vmatpush3.bf16.msra.mxu1 %v2956_v17  ;;  %v611_v47 = vld [vmem:[%s3368_s24 + $0x30] sm:$0xff]  ;;  %v612_v54 = vld [vmem:[%s3368_s24 + $0x38] sm:$0xff]  ;;  %v1062_v57 = vld [vmem:[%s4415_s4 + $0x48] sm:$0xff] }
  0x13   : > { %2945 = vmatprep.subr.bf16.mxu0 %v2944_v23  ;;  %2961 = vmatprep.subr.bf16.mxu1 %v2960_v24  ;;  %v1743_v59 = vld [vmem:[%s4416_s5 + $0x40] sm:$0xff]  ;;  %v1744_v60 = vld [vmem:[%s4416_s5 + $0x48] sm:$0xff]  ;;  %v2977_v61 = vpack.c.bf16 %v1062_v57, %v1061_v56  ;;  %v1063_v62 = vld [vmem:[%s4415_s4 + $0x50] sm:$0xff] }
  0x14   : > { %v1064_v63 = vld [vmem:[%s4415_s4 + $0x58] sm:$0xff]  ;;  %v3085_v0 = vpack.c.bf16 %v1744_v60, %v1743_v59  ;;  %v1745_v1 = vld [vmem:[%s4416_s5 + $0x50] sm:$0xff]  ;;  %v1065_v4 = vld [vmem:[%s4415_s4 + $0x60] sm:$0xff] }
  0x15   : > { %v1746_v2 = vld [vmem:[%s4416_s5 + $0x58] sm:$0xff]  ;;  %v2980_v3 = vpack.c.bf16 %v1064_v63, %v1063_v62  ;;  %v1066_v5 = vld [vmem:[%s4415_s4 + $0x68] sm:$0xff]  ;;  %v1747_v7 = vld [vmem:[%s4416_s5 + $0x60] sm:$0xff] }
  0x16   : > { %2947 = vmatpush3.bf16.msra.mxu0 %v2944_v23  ;;  %2963 = vmatpush3.bf16.msra.mxu1 %v2960_v24  ;;  %v3088_v6 = vpack.c.bf16 %v1746_v2, %v1745_v1  ;;  %v1748_v8 = vld [vmem:[%s4416_s5 + $0x68] sm:$0xff]  ;;  %v2983_v9 = vpack.c.bf16 %v1066_v5, %v1065_v4  ;;  %v1067_v10 = vld [vmem:[%s4415_s4 + $0x70] sm:$0xff]  ;;  %v1068_v11 = vld [vmem:[%s4415_s4 + $0x78] sm:$0xff] }
  0x17   : > { %2964 = vmatprep.subr.bf16.mxu0 %v3261_v31  ;;  %3072 = vmatprep.subr.bf16.mxu1 %v3261_v31  ;;  %v3091_v12 = vpack.c.bf16 %v1748_v8, %v1747_v7  ;;  %v2986_v13 = vpack.c.bf16 %v1068_v11, %v1067_v10  ;;  %v1069_v14 = vld [vmem:[%s4415_s4 + $0x80] sm:$0xff]  ;;  %v1070_v15 = vld [vmem:[%s4415_s4 + $0x88] sm:$0xff]  ;;  %v1749_v17 = vld [vmem:[%s4416_s5 + $0x70] sm:$0xff] }
  0x18   : > { %v2989_v16 = vpack.c.bf16 %v1070_v15, %v1069_v14  ;;  %v1750_v18 = vld [vmem:[%s4416_s5 + $0x78] sm:$0xff]  ;;  %v947_v20 = vld [vmem:[%s3518_s20 + $0x8] sm:$0xff]  ;;  %v1071_v21 = vld [vmem:[%s4415_s4 + $0x90] sm:$0xff] }
  0x19   : > { %2761 = vmatmul.mubr.msk.f32.vlgmr.msra.gmra.mrb[0].mxu0 %vm621_vm0, %v606_v29  ;;  %2789 = vmatmul.mubr.msk.f32.vlgmr.msra.gmra.mrb[0].mxu1 %vm621_vm0, %v606_v29  ;;  %v3094_v19 = vpack.c.bf16 %v1750_v18, %v1749_v17  ;;  %v1072_v22 = vld [vmem:[%s4415_s4 + $0x98] sm:$0xff]  ;;  %v1751_v23 = vld [vmem:[%s4416_s5 + $0x80] sm:$0xff]  ;;  %v1752_v25 = vld [vmem:[%s4416_s5 + $0x88] sm:$0xff]  ;;  %v963_v26 = vrot.slane %v947_v20, 7 }
  0x1a   : > { %2763 = vmatprep.mubr.msk.f32.mxu0 %vm621_vm0, %v607_v30  ;;  %2791 = vmatprep.mubr.msk.f32.mxu1 %vm621_vm0, %v607_v30  ;;  %v2992_v24 = vpack.c.bf16 %v1072_v22, %v1071_v21  ;;  %v3097_v27 = vpack.c.bf16 %v1752_v25, %v1751_v23  ;;  %v946_v28 = vld [vmem:[%s3518_s20] sm:$0xff]  ;;  %v948_v29 = vld [vmem:[%s3518_s20 + $0x10] sm:$0xff]  ;;  %v1074_v34 = vld [vmem:[%s4415_s4 + $0xa8] sm:$0xff] }
  0x1b   : > { %2966 = vmatpush1.bf16.msra.mxu0 %v2965_v32  ;;  %3074 = vmatpush1.bf16.msra.mxu1 %v3073_v35  ;;  %v962_v30 = vrot.slane %v946_v28, 7  ;;  %v380_v32 = vlaneseq  ;;  %v1073_v33 = vld [vmem:[%s4415_s4 + $0xa0] sm:$0xff]  ;;  %v1753_v35 = vld [vmem:[%s4416_s5 + $0x90] sm:$0xff]  ;;  %v1754_v37 = vld [vmem:[%s4416_s5 + $0x98] sm:$0xff] }
  0x1c   : > { %2967 = vmatprep.subr.bf16.mxu0 %v3261_v31  ;;  %3075 = vmatprep.subr.bf16.mxu1 %v3261_v31  ;;  %v2995_v36 = vpack.c.bf16 %v1074_v34, %v1073_v33  ;;  %v949_v41 = vld [vmem:[%s3518_s20 + $0x18] sm:$0xff]  ;;  %v1755_v45 = vld [vmem:[%s4416_s5 + $0xa0] sm:$0xff]  ;;  %v951_v2 = vld [vmem:[%s3518_s20 + $0x28] sm:$0xff] }
  0x1d   : > { %2764 = vmatmul.mubr.msk.f32.gmra.mrb[2].mxu0 %vm621_vm0, %v608_v38  ;;  %2792 = vmatmul.mubr.msk.f32.gmra.mrb[2].mxu1 %vm621_vm0, %v608_v38  ;;  %987 = vst.msk [vmem:[#allocation2 + $0x8] sm:$0xfe] %vm986_vm2, %v962_v30  ;;  %v965_v38 = vrot.slane %v948_v29, 7  ;;  %v3559_v42 = vshrl.u32 %v380_v32, 7  ;;  %v1076_v44 = vld [vmem:[%s4415_s4 + $0xb8] sm:$0xff]  ;;  %v950_v63 = vld [vmem:[%s3518_s20 + $0x20] sm:$0xff] }
  0x1e   : > { %2766 = vmatprep.mubr.msk.f32.mxu0 %vm621_vm0, %v609_v39  ;;  %2794 = vmatprep.mubr.msk.f32.mxu1 %vm621_vm0, %v609_v39  ;;  %v3100_v39 = vpack.c.bf16 %v1754_v37, %v1753_v35  ;;  %v1758_v56 = vld [vmem:[%s4416_s5 + $0xb8] sm:$0xff]  ;;  %v969_v1 = vrot.slane %v950_v63, 7  ;;  %v952_v5 = vld [vmem:[%s3518_s20 + $0x30] sm:$0xff] }
  0x1f   : > { %2969 = vmatpush1.bf16.msra.mxu0 %v2968_v40  ;;  %3077 = vmatpush1.bf16.msra.mxu1 %v3076_v43  ;;  %v964_v40 = vsel %vm912_vm1, %v962_v30, %v963_v26  ;;  %v1075_v43 = vld [vmem:[%s4415_s4 + $0xb0] sm:$0xff]  ;;  %v393_v49 = vand.u32 15, %v3559_v42  ;;  %v953_v8 = vld [vmem:[%s3518_s20 + $0x38] sm:$0xff]  ;;  %v383_v15 = vadd.s32 16, %v3559_v42  ;;  %v3625_v17 = vadd.s32 40, %v3559_v42 }
  0x20   : > { %2970 = vmatprep.subr.bf16.mxu0 %v3261_v31  ;;  %3078 = vmatprep.subr.bf16.mxu1 %v3261_v31  ;;  %988 = vst.msk [vmem:[#allocation2 + $0x18] sm:$0xff] %vm621_vm0, %v964_v40  ;;  %v3630_v21 = vadd.s32 32, %v3559_v42  ;;  %v3639_v25 = vadd.s32 48, %v3559_v42 }
  0x21   : > { %2767 = vmatmul.mubr.msk.f32.gmra.mrb[4].mxu0 %vm621_vm0, %v610_v46  ;;  %2795 = vmatmul.mubr.msk.f32.gmra.mrb[4].mxu1 %vm621_vm0, %v610_v46  ;;  %v2998_v46 = vpack.c.bf16 %v1076_v44, %v1075_v43  ;;  %vm3578_vm3 = vcmp.ne.s32.totalorder %v393_v49, 0  ;;  %v407_v20 = vand.u32 15, %v383_v15  ;;  %v428_v23 = vand.u32 15, %v3625_v17 }
  0x22   : > { %2769 = vmatprep.mubr.msk.f32.mxu0 %vm621_vm0, %v611_v47  ;;  %2797 = vmatprep.mubr.msk.f32.mxu1 %vm621_vm0, %v611_v47  ;;  %v1756_v47 = vld [vmem:[%s4416_s5 + $0xa8] sm:$0xff]  ;;  %v421_v29 = vand.u32 15, %v3630_v21 }
  0x23   : > { %2972 = vmatpush1.bf16.msra.mxu0 %v2971_v48  ;;  %3080 = vmatpush1.bf16.msra.mxu1 %v3079_v51  ;;  %v967_v48 = vrot.slane %v949_v41, 7  ;;  %v3103_v50 = vpack.c.bf16 %v1756_v47, %v1755_v45  ;;  %v966_v51 = vsel %vm912_vm1, %v963_v26, %v965_v38  ;;  %v503_v28 = vand.u32 1, %v407_v20  ;;  %v3663_v47 = vld [vmem:[%s4415_s4 + $0xc8] sm:$0xff] }
  0x24   : > { %2973 = vmatprep.subr.bf16.mxu0 %v3261_v31  ;;  %3081 = vmatprep.subr.bf16.mxu1 %v3261_v31  ;;  %989 = vst.msk [vmem:[#allocation2 + $0x28] sm:$0xff] %vm621_vm0, %v966_v51  ;;  %v1006_v53 = vld [vmem:[#allocation2 + $0x8] sm:$0xff]  ;;  %v524_v35 = vand.u32 1, %v428_v23  ;;  %vm3676_vm11 = vcmp.ne.s32.totalorder %v407_v20, 0 }
  0x25   : > { %2770 = vmatmul.mubr.msk.f32.gmra.mrb[6].mxu0 %vm621_vm0, %v612_v54  ;;  %2798 = vmatmul.mubr.msk.f32.gmra.mrb[6].mxu1 %vm621_vm0, %v612_v54  ;;  %v1038_v54 = vsel %vm3578_vm3, %v1006_v53, 0.0  ;;  %v1718_v59 = vld [vmem:[#allocation2 + $0x8] sm:$0xfe]  ;;  %v968_v60 = vsel %vm912_vm1, %v965_v38, %v967_v48  ;;  %v970_v4 = vsel %vm912_vm1, %v967_v48, %v969_v1  ;;  %vm583_vm9 = vcmp.eq.s32.totalorder %v503_v28, 0  ;;  %v3668_v48 = vld [vmem:[%s4415_s4 + $0xd0] sm:$0xff]  ;;  %v3674_v53 = vld [vmem:[%s4415_s4 + $0xd8] sm:$0xff] }
  0x26   : > { %2509 = vmatprep.mubr.msk.f32.mxu0 %vm621_vm0, %v1038_v54  ;;  %990 = vst.msk [vmem:[#allocation2 + $0x38] sm:$0xff] %vm621_vm0, %v968_v60  ;;  %991 = vst.msk [vmem:[#allocation2 + $0x48] sm:$0xff] %vm621_vm0, %v970_v4  ;;  %vm586_vm10 = vcmp.eq.s32.totalorder %v524_v35, 0 }
  0x27   : > { %2975 = vmatpush1.bf16.msra.mxu0 %v2974_v55  ;;  %3083 = vmatpush1.bf16.msra.mxu1 %v3082_v58  ;;  %v1757_v55 = vld [vmem:[%s4416_s5 + $0xb0] sm:$0xff]  ;;  %v3593_v58 = vld [vmem:[#allocation2 + $0x18] sm:$0xff] }
  0x28   : > { %2976 = vmatprep.subr.bf16.mxu0 %v3261_v31  ;;  %3084 = vmatprep.subr.bf16.mxu1 %v3261_v31  ;;  %v3106_v57 = vpack.c.bf16 %v1758_v56, %v1757_v55  ;;  %v3597_v62 = vrot.slane %v3593_v58, 1 }
  0x2b   : > { %2978 = vmatpush1.bf16.msra.mxu0 %v2977_v61  ;;  %3086 = vmatpush1.bf16.msra.mxu1 %v3085_v0  ;;  %v1780_v61 = vrot.slane %v1718_v59, 1  ;;  %v3680_v55 = vld [vmem:[#allocation2 + $0x28] sm:$0xff] }
  0x2c   : > { %2979 = vmatprep.subr.bf16.mxu0 %v3261_v31  ;;  %3087 = vmatprep.subr.bf16.mxu1 %v3261_v31 }
  0x2d   : > { %v1782_v0 = vsel %vm1275_vm4, %v1780_v61, %v3597_v62  ;;  %v3688_v61 = vld [vmem:[#allocation2 + $0x38] sm:$0xff] }
  0x2e   : > { %2589 = vmatprep.mubr.msk.f32.mxu1 %vm621_vm0, %v1782_v0  ;;  %v1789_v15 = vrot.slane %v3688_v61, 1 }
  0x2f   : > { %2981 = vmatpush1.bf16.msra.mxu0 %v2980_v3  ;;  %3089 = vmatpush1.bf16.msra.mxu1 %v3088_v6  ;;  %v971_v3 = vrot.slane %v951_v2, 7  ;;  %v973_v6 = vrot.slane %v952_v5, 7 }
  0x30   : > { %2982 = vmatprep.subr.bf16.mxu0 %v3261_v31  ;;  %3090 = vmatprep.subr.bf16.mxu1 %v3261_v31 }
  0x31   : > { %v972_v7 = vsel %vm912_vm1, %v969_v1, %v971_v3  ;;  %v974_v10 = vsel %vm912_vm1, %v971_v3, %v973_v6 }
  0x32   : > { %992 = vst.msk [vmem:[#allocation2 + $0x58] sm:$0xff] %vm621_vm0, %v972_v7  ;;  %993 = vst.msk [vmem:[#allocation2 + $0x68] sm:$0xff] %vm621_vm0, %v974_v10  ;;  %v1785_v7 = vrot.slane %v3680_v55, 1 }
  0x33   : > { %2984 = vmatpush1.bf16.msra.mxu0 %v2983_v9  ;;  %3092 = vmatpush1.bf16.msra.mxu1 %v3091_v12  ;;  %v975_v9 = vrot.slane %v953_v8, 7  ;;  %v3616_v12 = vadd.s32 8, %v3559_v42 }
  0x34   : > { %2985 = vmatprep.subr.bf16.mxu0 %v3261_v31  ;;  %3093 = vmatprep.subr.bf16.mxu1 %v3261_v31 }
  0x35   : > { %v976_v11 = vsel %vm912_vm1, %v973_v6, %v975_v9  ;;  %996 = vst.msk [vmem:[#allocation2 + $0x88] sm:$0x1] %vm995_vm5, %v975_v9  ;;  %v400_v14 = vand.u32 15, %v3616_v12  ;;  %v3004_v6 = vpack.c.bf16 %v3674_v53, %v3668_v48  ;;  %v2528_v48 = vld [vmem:[%s4415_s4 + $0xf8] sm:$0xff] }
  0x36   : > { %994 = vst.msk [vmem:[#allocation2 + $0x78] sm:$0xff] %vm621_vm0, %v976_v11  ;;  %v1042_v11 = vsel %vm3676_vm11, %v3680_v55, 0.0 }
  0x37   : > { %2987 = vmatpush1.bf16.msra.mxu0 %v2986_v13  ;;  %3095 = vmatpush1.bf16.msra.mxu1 %v3094_v19  ;;  %v3619_v13 = vadd.s32 24, %v3559_v42  ;;  %v496_v18 = vand.u32 1, %v400_v14  ;;  %v489_v19 = vand.u32 1, %v393_v49 }
  0x38   : > { %2988 = vmatprep.subr.bf16.mxu0 %v3261_v31  ;;  %3096 = vmatprep.subr.bf16.mxu1 %v3261_v31 }
  0x39   : > { %vm582_vm6 = vcmp.eq.s32.totalorder %v496_v18, 0  ;;  %vm581_vm7 = vcmp.eq.s32.totalorder %v489_v19, 0 }
  0x3b   : > { %2990 = vmatpush1.bf16.msra.mxu0 %v2989_v16  ;;  %3098 = vmatpush1.bf16.msra.mxu1 %v3097_v27  ;;  %v414_v16 = vand.u32 15, %v3619_v13  ;;  %v3644_v27 = vld [vmem:[%s4418_s7] ss:$0 sm:$0xff] }
  0x3c   : > { %2991 = vmatprep.subr.bf16.mxu0 %v3261_v31  ;;  %3099 = vmatprep.subr.bf16.mxu1 %v3261_v31 }
  0x3d   : > { %v510_v22 = vand.u32 1, %v414_v16  ;;  %vm4105_vm5 = vcmp.ne.s32.totalorder %v414_v16, 15 }
  0x3f   : > { %2993 = vmatpush1.bf16.msra.mxu0 %v2992_v24  ;;  %3101 = vmatpush1.bf16.msra.mxu1 %v3100_v39  ;;  %v3636_v24 = vadd.s32 56, %v3559_v42  ;;  %vm584_vm8 = vcmp.eq.s32.totalorder %v510_v22, 0  ;;  %v435_v39 = vand.u32 15, %v3639_v25  ;;  %v517_v42 = vand.u32 1, %v421_v29 }
  0x40   : > { %2994 = vmatprep.subr.bf16.mxu0 %v3261_v31  ;;  %3102 = vmatprep.subr.bf16.mxu1 %v3261_v31 }
  0x41   : > { %v442_v38 = vand.u32 15, %v3636_v24  ;;  %v531_v60 = vand.u32 1, %v435_v39  ;;  %vm585_vm12 = vcmp.eq.s32.totalorder %v517_v42, 0  ;;  %vm3884_vm2 = vcmp.ne.s32.totalorder %v435_v39, 0  ;;  %v2533_v39 = vld [vmem:[%s4415_s4 + $0x120] sm:$0xff] }
  0x43   : > { %2996 = vmatpush1.bf16.msra.mxu0 %v2995_v36  ;;  %3104 = vmatpush1.bf16.msra.mxu1 %v3103_v50  ;;  %v538_v59 = vand.u32 1, %v442_v38  ;;  %vm587_vm15 = vcmp.eq.s32.totalorder %v531_v60, 0  ;;  %v3750_v60 = vsel %vm1275_vm4, %v3597_v62, %v1785_v7 }
  0x44   : > { %2997 = vmatprep.subr.bf16.mxu0 %v3261_v31  ;;  %3105 = vmatprep.subr.bf16.mxu1 %v3261_v31 }
  0x45   : > { %vm588_vm14 = vcmp.eq.s32.totalorder %v538_v59, 0 }
  0x47   : > { %2999 = vmatpush1.bf16.msra.mxu0 %v2998_v46  ;;  %3107 = vmatpush1.bf16.msra.mxu1 %v3106_v57  ;;  %v3658_v46 = vld [vmem:[%s4415_s4 + $0xc0] sm:$0xff] }
  0x48   : > { %3000 = vmatprep.subr.bf16.mxu0 %v3261_v31  ;;  %v3001_v1 = vpack.c.bf16 %v3663_v47, %v3658_v46 }
  0xec   : > { %v2762_v26 = vpop.f32.mrb[0].mxu0  ;;  %v2790_v30 = vpop.f32.mrb[0].mxu1 }
  0xed   : > { %v712_v32 = vpop.f32.mrb[1].mxu0  ;;  %v882_v33 = vsel %vm582_vm6, %v2762_v26, %v2790_v30  ;;  %v826_v34 = vpop.f32.mrb[1].mxu1  ;;  %vm4123_vm6 = vcmp.ne.s32.totalorder %v428_v23, 15 }
  0xee   : > { %v897_v36 = vadd.f32 %v3644_v27, %v882_v33  ;;  %v881_v37 = vsel %vm581_vm7, %v712_v32, %v826_v34  ;;  %vm4140_vm7 = vcmp.ne.s32.totalorder %v442_v38, 15 }
  0xef   : > { %v896_v40 = vadd.f32 %v3644_v27, %v881_v37 }
  0xf0   : > { %v2765_v41 = vpop.f32.mrb[2].mxu0  ;;  %v914_v43 = vrot.slane %v897_v36, 7  ;;  %v2793_v44 = vpop.f32.mrb[2].mxu1 }
  0xf1   : > { %v722_v45 = vpop.f32.mrb[3].mxu0  ;;  %v913_v49 = vrot.slane %v896_v40, 7  ;;  %v884_v50 = vsel %vm584_vm8, %v2765_v41, %v2793_v44  ;;  %v836_v51 = vpop.f32.mrb[3].mxu1  ;;  %v3721_v41 = vld [vmem:[%s4415_s4 + $0xe0] sm:$0xff] }
  0xf2   : > { %v899_v56 = vadd.f32 %v3644_v27, %v884_v50  ;;  %v883_v57 = vsel %vm583_vm9, %v722_v45, %v836_v51 }
  0xf3   : > { %v3691_v63 = vsel %vm912_vm1, %v913_v49, %v914_v43  ;;  %937 = vst [vmem:[#allocation2] sm:$0xfe] %v913_v49  ;;  %v898_v0 = vadd.f32 %v3644_v27, %v883_v57  ;;  %v2526_v49 = vld [vmem:[%s4415_s4 + $0xe8] sm:$0xff] }
  0xf4   : > { %v2768_v2 = vpop.f32.mrb[4].mxu0  ;;  %v918_v3 = vrot.slane %v899_v56, 7  ;;  %v2796_v4 = vpop.f32.mrb[4].mxu1  ;;  %v3713_v28 = vrot.slane %v3691_v63, 1  ;;  %v1473_v37 = vrot.slane %v3691_v63, 2 }
  0xf5   : > { %v732_v5 = vpop.f32.mrb[5].mxu0  ;;  %v916_v8 = vrot.slane %v898_v0, 7  ;;  %v886_v9 = vsel %vm586_vm10, %v2768_v2, %v2796_v4  ;;  %v846_v10 = vpop.f32.mrb[5].mxu1 }
  0xf6   : > { %v901_v18 = vadd.f32 %v3644_v27, %v886_v9  ;;  %v885_v19 = vsel %vm585_vm12, %v732_v5, %v846_v10 }
  0xf7   : > { %v3706_v20 = vsel %vm912_vm1, %v914_v43, %v916_v8  ;;  %v3709_v22 = vsel %vm912_vm1, %v916_v8, %v918_v3  ;;  %v900_v26 = vadd.f32 %v3644_v27, %v885_v19  ;;  %v3752_v8 = vld [vmem:[#allocation2 + $0x48] sm:$0xff]  ;;  %v3768_v19 = vsel %vm1275_vm4, %v1785_v7, %v1789_v15 }
  0xf8   : > { %v2771_v30 = vpop.f32.mrb[6].mxu0  ;;  %v922_v32 = vrot.slane %v901_v18, 7  ;;  %v1783_v33 = vrot.slane %v3706_v20, 1  ;;  %v2799_v34 = vpop.f32.mrb[6].mxu1  ;;  %v1787_v36 = vrot.slane %v3709_v22, 1  ;;  %v1478_v44 = vrot.slane %v3706_v20, 2 }
  0xf9   : > { %v742_v35 = vpop.f32.mrb[7].mxu0  ;;  %v920_v40 = vrot.slane %v900_v26, 7  ;;  %v888_v42 = vsel %vm588_vm14, %v2771_v30, %v2799_v34  ;;  %v856_v43 = vpop.f32.mrb[7].mxu1  ;;  %v1482_v45 = vrot.slane %v3709_v22, 2 }
  0xfa   : > { %v1005_v46 = vld [vmem:[#allocation2] sm:$0xff]  ;;  %v3730_v50 = vsel %vm1275_vm4, %v3713_v28, %v1783_v33  ;;  %v903_v51 = vadd.f32 %v3644_v27, %v888_v42  ;;  %v887_v56 = vsel %vm587_vm15, %v742_v35, %v856_v43  ;;  %v3735_v57 = vsel %vm1275_vm4, %v1783_v33, %v1787_v36  ;;  %v2527_v43 = vld [vmem:[%s4415_s4 + $0xf0] sm:$0xff] }
  0xfb   : > { %v1717_v47 = vld [vmem:[#allocation2] sm:$0xfe]  ;;  %2510 = vmatmul.mubr.msk.f32.vlgmr.msra.gmra.mrb[8].mxu0 %vm3578_vm3, %v1005_v46  ;;  %v3740_v59 = vsel %vm912_vm1, %v918_v3, %v920_v40  ;;  %v3743_v0 = vsel %vm912_vm1, %v920_v40, %v922_v32  ;;  %v902_v4 = vadd.f32 %v3644_v27, %v887_v56  ;;  %v3763_v18 = vsel %vm1471_vm13, %v1473_v37, %v1478_v44 }
  0xfc   : > { %v1777_v2 = vrot.slane %v1717_v47, 1  ;;  %3002 = vmatpush1.bf16.msra.mxu0 %v3001_v1  ;;  %2511 = vmatprep.mubr.msk.f32.mxu0 %vm621_vm0, %v3593_v58  ;;  %v926_v5 = vrot.slane %v903_v51, 7  ;;  %v1791_v3 = vrot.slane %v3740_v59, 1  ;;  %v1795_v9 = vrot.slane %v3743_v0, 1  ;;  %v2529_v56 = vld [vmem:[%s4415_s4 + $0x100] sm:$0xff] }
  0xfd   : > { %3003 = vmatprep.subr.bf16.mxu0 %v3261_v31  ;;  %v3007_v1 = vpack.c.bf16 %v2526_v49, %v3721_v41  ;;  %v924_v10 = vrot.slane %v902_v4, 7  ;;  %v3777_v33 = vsel %vm1471_vm13, %v1478_v44, %v1482_v45  ;;  %v1793_v35 = vrot.slane %v3752_v8, 1 }
  0xfe   : > { %v1779_v27 = vsel %vm1275_vm4, %v1777_v2, %v3713_v28  ;;  %945 = vst [vmem:[#allocation2 + $0x80] sm:$0x1] %v926_v5  ;;  %v3771_v26 = vsel %vm1275_vm4, %v1787_v36, %v1791_v3  ;;  %v3774_v30 = vsel %vm1275_vm4, %v1791_v3, %v1795_v9  ;;  %v1486_v36 = vrot.slane %v3740_v59, 2  ;;  %v2530_v2 = vld [vmem:[%s4415_s4 + $0x108] sm:$0xff] }
  0xff   : > { %1900 = vmatmul.mubr.f32.vlgmr.msra.gmra.mrb[8].mxu1 %v1779_v27  ;;  %1171 = vmatmul.mubr.f32.gmra.mrb[10].mxu0 %v3691_v63  ;;  %v3783_v34 = vsel %vm912_vm1, %v922_v32, %v924_v10  ;;  %v3786_v7 = vsel %vm912_vm1, %v924_v10, %v926_v5  ;;  %v1490_v32 = vrot.slane %v3743_v0, 2  ;;  %vm3809_vm1 = vcmp.ne.s32.totalorder %v421_v29, 0  ;;  %v3861_v5 = vld [vmem:[#allocation2 + $0x68] sm:$0xff]  ;;  %v2531_v27 = vld [vmem:[%s4415_s4 + $0x110] sm:$0xff] }
 0x100   : > { %2590 = vmatprep.mubr.msk.f32.mxu1 %vm621_vm0, %v3750_v60  ;;  %3005 = vmatpush1.bf16.msra.mxu0 %v3004_v6  ;;  %v1799_v40 = vrot.slane %v3783_v34, 1  ;;  %v3796_v41 = vrot.slane %v3786_v7, 1  ;;  %v1494_v42 = vrot.slane %v3783_v34, 2  ;;  %v3813_v6 = vld [vmem:[#allocation2 + $0x58] sm:$0xff]  ;;  %v1498_v44 = vrot.slane %v3786_v7, 2 }
 0x101   : > { %2512 = vmatprep.mubr.msk.f32.mxu0 %vm621_vm0, %v1042_v11  ;;  %3006 = vmatprep.subr.bf16.mxu0 %v3261_v31  ;;  %v3816_v11 = vsel %vm1471_vm13, %v1482_v45, %v1486_v36  ;;  %v3828_v21 = vsel %vm1471_vm13, %v1486_v36, %v1490_v32  ;;  %v3010_v49 = vpack.c.bf16 %v2528_v48, %v2527_v43  ;;  %v1046_v4 = vsel %vm3809_vm1, %v3752_v8, 0.0 }
 0x102   : > { %v3821_v46 = vsel %vm1275_vm4, %v1795_v9, %v1799_v40  ;;  %v3825_v47 = vsel %vm1275_vm4, %v1799_v40, %v3796_v41  ;;  %v3831_v29 = vsel %vm1471_vm13, %v1490_v32, %v1494_v42  ;;  %v3841_v45 = vsel %vm1471_vm13, %v1494_v42, %v1498_v44  ;;  %v1734_v32 = vld [vmem:[#allocation2 + $0x88] sm:$0x1]  ;;  %v1215_v42 = vld [vmem:[#allocation2 + $0x8] sm:$0xfe] }
 0x103   : > { %1905 = vmatmul.mubr.f32.gmra.mrb[10].mxu1 %v3730_v50  ;;  %2513 = vmatmul.mubr.msk.f32.gmra.mrb[12].mxu0 %vm3676_vm11, %v3706_v20  ;;  %v3848_v51 = vsel %vm1275_vm4, %v1789_v15, %v1793_v35  ;;  %v1797_v20 = vrot.slane %v3813_v6, 1  ;;  %v3013_v15 = vpack.c.bf16 %v2530_v2, %v2529_v56  ;;  %v1801_v9 = vrot.slane %v3861_v5, 1  ;;  %v2535_v56 = vld [vmem:[%s4415_s4 + $0x130] sm:$0xff] }
 0x104   : > { %2591 = vmatprep.mubr.msk.f32.mxu1 %vm621_vm0, %v3768_v19  ;;  %3008 = vmatpush1.bf16.msra.mxu0 %v3007_v1  ;;  %v3879_v1 = vld [vmem:[#allocation2 + $0x78] sm:$0xff]  ;;  %v1050_v40 = vsel %vm3884_vm2, %v3861_v5, 0.0  ;;  %v1279_v2 = vrot.slane %v1215_v42, 1  ;;  %v2542_v42 = vld [vmem:[%s4415_s4 + $0x168] sm:$0xff]  ;;  %v1492_v63 = vrot.slane %v3813_v6, 2 }
 0x105   : > { %2514 = vmatprep.mubr.msk.f32.mxu0 %vm621_vm0, %v3688_v61  ;;  %3009 = vmatprep.subr.bf16.mxu0 %v3261_v31  ;;  %v3869_v3 = vsel %vm1275_vm4, %v1793_v35, %v1797_v20  ;;  %v3896_v36 = vsel %vm1275_vm4, %v1797_v20, %v1801_v9  ;;  %v3899_v25 = vrot.slane %v3879_v1, 1  ;;  %v1733_v20 = vld [vmem:[#allocation2 + $0x80] sm:$0x1] }
 0x106   : > { %v1449_v24 = vld [vmem:[#allocation2 + $0x80] sm:$0x3] }
 0x107   : > { %1910 = vmatmul.mubr.f32.gmra.mrb[12].mxu1 %v3735_v57  ;;  %1181 = vmatmul.mubr.f32.gmra.mrb[14].mxu0 %v3709_v22  ;;  %v2532_v22 = vld [vmem:[%s4415_s4 + $0x118] sm:$0xff]  ;;  %v3918_v48 = vsel %vm1275_vm4, %v1801_v9, %v3899_v25 }
 0x108   : > { %2592 = vmatprep.mubr.msk.f32.mxu1 %vm621_vm0, %v3848_v51  ;;  %3011 = vmatpush1.bf16.msra.mxu0 %v3010_v49  ;;  %v3016_v35 = vpack.c.bf16 %v2532_v22, %v2531_v27  ;;  %v1809_v49 = vrot.slane %v1734_v32, 1  ;;  %v2537_v27 = vld [vmem:[%s4415_s4 + $0x140] sm:$0xff]  ;;  %v1281_v22 = vsel %vm1275_vm4, %v1279_v2, %v3597_v62  ;;  %v2540_v62 = vld [vmem:[%s4415_s4 + $0x158] sm:$0xff] }
 0x109   : > { %2515 = vmatprep.mubr.msk.f32.mxu0 %vm621_vm0, %v1046_v4  ;;  %3012 = vmatprep.subr.bf16.mxu0 %v3261_v31  ;;  %v1807_v4 = vrot.slane %v1733_v20, 1  ;;  %v2541_v32 = vld [vmem:[%s4415_s4 + $0x160] sm:$0xff]  ;;  %v2544_v20 = vld [vmem:[%s4415_s4 + $0x178] sm:$0xff] }
 0x10a   : > { %v1810_v9 = vsel %vm1275_vm4, %v3899_v25, %v1809_v49  ;;  %v2543_v49 = vld [vmem:[%s4415_s4 + $0x170] sm:$0xff]  ;;  %v2553_v2 = vld [vmem:[%s4415_s4 + $0x180] sm:$0xff] }
 0x10b   : > { %1915 = vmatmul.mubr.f32.gmra.mrb[14].mxu1 %v3771_v26  ;;  %2516 = vmatmul.mubr.msk.f32.gmra.mrb[16].mxu0 %vm3809_vm1, %v3740_v59  ;;  %v2534_v59 = vld [vmem:[%s4415_s4 + $0x128] sm:$0xff] }
 0x10c   : > { %2593 = vmatprep.mubr.msk.f32.mxu1 %vm621_vm0, %v3869_v3  ;;  %3014 = vmatpush1.bf16.msra.mxu0 %v3013_v15  ;;  %v3019_v43 = vpack.c.bf16 %v2534_v59, %v2533_v39  ;;  %v2539_v59 = vld [vmem:[%s4415_s4 + $0x150] sm:$0xff] }
 0x10d   : > { %2517 = vmatprep.mubr.msk.f32.mxu0 %vm621_vm0, %v3813_v6  ;;  %3015 = vmatprep.subr.bf16.mxu0 %v3261_v31  ;;  %v1500_v6 = vrot.slane %v3879_v1, 2 }
 0x10f   : > { %1920 = vmatmul.mubr.f32.gmra.mrb[16].mxu1 %v3774_v30  ;;  %1191 = vmatmul.mubr.f32.gmra.mrb[18].mxu0 %v3743_v0  ;;  %v2536_v0 = vld [vmem:[%s4415_s4 + $0x138] sm:$0xff] }
 0x110   : > { %2594 = vmatprep.mubr.msk.f32.mxu1 %vm621_vm0, %v3896_v36  ;;  %3017 = vmatpush1.bf16.msra.mxu0 %v3016_v35  ;;  %v3022_v15 = vpack.c.bf16 %v2536_v0, %v2535_v56  ;;  %v1808_v35 = vsel %vm1275_vm4, %v3796_v41, %v1807_v4  ;;  %v1214_v56 = vld [vmem:[#allocation2] sm:$0xfe]  ;;  %v3034_v0 = vpack.c.bf16 %v2544_v20, %v2543_v49  ;;  %v2554_v4 = vld [vmem:[%s4415_s4 + $0x188] sm:$0xff] }
 0x111   : > { %2518 = vmatprep.mubr.msk.f32.mxu0 %vm621_vm0, %v1050_v40  ;;  %3018 = vmatprep.subr.bf16.mxu0 %v3261_v31  ;;  %v3028_v40 = vpack.c.bf16 %v2540_v62, %v2539_v59  ;;  %v2558_v59 = vld [vmem:[%s4415_s4 + $0x1a8] sm:$0xff]  ;;  %v2560_v62 = vld [vmem:[%s4415_s4 + $0x1b8] sm:$0xff] }
 0x112   : > { %v1448_v20 = vld [vmem:[#allocation2 + $0x8] sm:$0xfc] }
 0x113   : > { %1925 = vmatmul.mubr.f32.gmra.mrb[18].mxu1 %v3821_v46  ;;  %2519 = vmatmul.mubr.msk.f32.gmra.mrb[20].mxu0 %vm3884_vm2, %v3783_v34  ;;  %v2538_v34 = vld [vmem:[%s4415_s4 + $0x148] sm:$0xff] }
 0x114   : > { %2595 = vmatprep.mubr.msk.f32.mxu1 %vm621_vm0, %v3918_v48  ;;  %3020 = vmatpush1.bf16.msra.mxu0 %v3019_v43  ;;  %v3025_v39 = vpack.c.bf16 %v2538_v34, %v2537_v27  ;;  %v3031_v43 = vpack.c.bf16 %v2542_v42, %v2541_v32  ;;  %v2555_v27 = vld [vmem:[%s4415_s4 + $0x190] sm:$0xff]  ;;  %v2556_v34 = vld [vmem:[%s4415_s4 + $0x198] sm:$0xff]  ;;  %v1231_v42 = vld [vmem:[#allocation2 + $0x88] sm:$0x1] }
 0x115   : > { %2520 = vmatprep.mubr.msk.f32.mxu0 %vm621_vm0, %v3879_v1  ;;  %3021 = vmatprep.subr.bf16.mxu0 %v3261_v31  ;;  %v2564_v32 = vld [vmem:[%s4415_s4 + $0x1d8] sm:$0xff]  ;;  %v1308_v49 = vrot.slane %v1231_v42, 1  ;;  %v1972_v1 = vld [vmem:[%s4417_s6 + $0x10] sm:$0xff] }
 0x117   : > { %1930 = vmatmul.mubr.f32.gmra.mrb[20].mxu1 %v3825_v47  ;;  %1201 = vmatmul.mubr.f32.gmra.mrb[22].mxu0 %v3786_v7 }
 0x118   : > { %2596 = vmatprep.mubr.msk.f32.mxu1 %vm621_vm0, %v1810_v9  ;;  %3023 = vmatpush1.bf16.msra.mxu0 %v3022_v15  ;;  %v1276_v15 = vrot.slane %v1214_v56, 1  ;;  %v3037_v9 = vpack.c.bf16 %v2554_v4, %v2553_v2  ;;  %v1309_v56 = vsel %vm1275_vm4, %v3899_v25, %v1308_v49  ;;  %v2568_v2 = vld [vmem:[%s4415_s4 + $0x1f8] sm:$0xff]  ;;  %v1476_v4 = vrot.slane %v3593_v58, 2  ;;  %v2569_v25 = vld [vmem:[%s4415_s4 + $0x200] sm:$0xff] }
 0x119   : > { %2545 = vmatprep.mubr.msk.f32.mxu0 %vm621_vm0, %v1281_v22  ;;  %3024 = vmatprep.subr.bf16.mxu0 %v3261_v31 }
 0x11a   : > { %v1278_v22 = vsel %vm1275_vm4, %v1276_v15, %v3713_v28 }
 0x11b   : > { %1935 = vmatmul.mubr.f32.gmra.mrb[22].mxu1 %v1808_v35  ;;  %v3040_v35 = vpack.c.bf16 %v2556_v34, %v2555_v27  ;;  %v2571_v34 = vld [vmem:[%s4415_s4 + $0x210] sm:$0xff] }
 0x11c   : > { %3026 = vmatpush1.bf16.msra.mxu0 %v3025_v39  ;;  %v2557_v39 = vld [vmem:[%s4415_s4 + $0x1a0] sm:$0xff] }
 0x11d   : > { %3027 = vmatprep.subr.bf16.mxu0 %v3261_v31  ;;  %v3043_v28 = vpack.c.bf16 %v2558_v59, %v2557_v39  ;;  %v2574_v39 = vld [vmem:[%s4415_s4 + $0x228] sm:$0xff] }
 0x120   : > { %3029 = vmatpush1.bf16.msra.mxu0 %v3028_v40  ;;  %v2562_v40 = vld [vmem:[%s4415_s4 + $0x1c8] sm:$0xff] }
 0x121   : > { %3030 = vmatprep.subr.bf16.mxu0 %v3261_v31 }
 0x124   : > { %3032 = vmatpush1.bf16.msra.mxu0 %v3031_v43  ;;  %v2566_v43 = vld [vmem:[%s4415_s4 + $0x1e8] sm:$0xff] }
 0x125   : > { %3033 = vmatprep.subr.bf16.mxu0 %v3261_v31 }
 0x128   : > { %3035 = vmatpush1.bf16.msra.mxu0 %v3034_v0  ;;  %v2567_v0 = vld [vmem:[%s4415_s4 + $0x1f0] sm:$0xff] }
 0x129   : > { %3036 = vmatprep.subr.bf16.mxu0 %v3261_v31 }
 0x12b   : > { %1399 = vmatmul.mubr.f32.vlgmr.msra.gmra.mrb[8].mxu0 %v1278_v22  ;;  %v2572_v22 = vld [vmem:[%s4415_s4 + $0x218] sm:$0xff] }
 0x12c   : > { %3038 = vmatpush1.bf16.msra.mxu0 %v3037_v9  ;;  %2546 = vmatprep.mubr.msk.f32.mxu0 %vm621_vm0, %v3750_v60  ;;  %v2559_v60 = vld [vmem:[%s4415_s4 + $0x1b0] sm:$0xff]  ;;  %v2570_v9 = vld [vmem:[%s4415_s4 + $0x208] sm:$0xff] }
 0x12d   : > { %3039 = vmatprep.subr.bf16.mxu0 %v3261_v31 }
 0x12f   : > { %1404 = vmatmul.mubr.f32.gmra.mrb[10].mxu0 %v3730_v50  ;;  %v3046_v50 = vpack.c.bf16 %v2560_v62, %v2559_v60  ;;  %v2576_v60 = vld [vmem:[%s4415_s4 + $0x238] sm:$0xff]  ;;  %v1480_v62 = vrot.slane %v3680_v55, 2  ;;  %v1484_v55 = vrot.slane %v3688_v61, 2 }
 0x130   : > { %3041 = vmatpush1.bf16.msra.mxu0 %v3040_v35  ;;  %2547 = vmatprep.mubr.msk.f32.mxu0 %vm621_vm0, %v3768_v19  ;;  %v2561_v19 = vld [vmem:[%s4415_s4 + $0x1c0] sm:$0xff]  ;;  %v3064_v35 = vpack.c.bf16 %v2572_v22, %v2571_v34  ;;  %v1985_v34 = vld [vmem:[%s4417_s6 + $0x78] sm:$0xff] }
 0x131   : > { %3042 = vmatprep.subr.bf16.mxu0 %v3261_v31  ;;  %v1485_v12 = vsel %vm1471_vm13, %v1480_v62, %v1484_v55 }
 0x133   : > { %1409 = vmatmul.mubr.f32.gmra.mrb[12].mxu0 %v3735_v57  ;;  %v3049_v57 = vpack.c.bf16 %v2562_v40, %v2561_v19 }
 0x134   : > { %3044 = vmatpush1.bf16.msra.mxu0 %v3043_v28  ;;  %2548 = vmatprep.mubr.msk.f32.mxu0 %vm621_vm0, %v3848_v51  ;;  %v2563_v51 = vld [vmem:[%s4415_s4 + $0x1d0] sm:$0xff] }
 0x135   : > { %3045 = vmatprep.subr.bf16.mxu0 %v3261_v31  ;;  %v2575_v28 = vld [vmem:[%s4415_s4 + $0x230] sm:$0xff] }
 0x136   : > { %v3070_v19 = vpack.c.bf16 %v2576_v60, %v2575_v28 }
 0x137   : > { %1414 = vmatmul.mubr.f32.gmra.mrb[14].mxu0 %v3771_v26  ;;  %v3052_v26 = vpack.c.bf16 %v2564_v32, %v2563_v51  ;;  %v1481_v51 = vsel %vm1471_vm13, %v1476_v4, %v1480_v62 }
 0x138   : > { %3047 = vmatpush1.bf16.msra.mxu0 %v3046_v50  ;;  %2549 = vmatprep.mubr.msk.f32.mxu0 %vm621_vm0, %v3869_v3  ;;  %v2565_v3 = vld [vmem:[%s4415_s4 + $0x1e0] sm:$0xff] }
 0x139   : > { %3048 = vmatprep.subr.bf16.mxu0 %v3261_v31  ;;  %v1447_v50 = vld [vmem:[#allocation2] sm:$0xfc] }
 0x13a   : > { %v1472_v40 = vrot.slane %v1447_v50, 2 }
 0x13b   : > { %1419 = vmatmul.mubr.f32.gmra.mrb[16].mxu0 %v3774_v30  ;;  %v1230_v30 = vld [vmem:[#allocation2 + $0x80] sm:$0x1] }
 0x13c   : > { %3050 = vmatpush1.bf16.msra.mxu0 %v3049_v57  ;;  %2550 = vmatprep.mubr.msk.f32.mxu0 %vm621_vm0, %v3896_v36  ;;  %v3055_v36 = vpack.c.bf16 %v2566_v43, %v2565_v3  ;;  %v1306_v15 = vrot.slane %v1230_v30, 1  ;;  %v1474_v42 = vsel %vm1471_vm13, %v1472_v40, %v1473_v37  ;;  %v1496_v37 = vrot.slane %v3861_v5, 2  ;;  %v1970_v3 = vld [vmem:[%s4417_s6] sm:$0xff]  ;;  %v1973_v43 = vld [vmem:[%s4417_s6 + $0x18] sm:$0xff]  ;;  %v1975_v30 = vld [vmem:[%s4417_s6 + $0x28] sm:$0xff] }
 0x13d   : > { %3051 = vmatprep.subr.bf16.mxu0 %v3261_v31  ;;  %v3112_v49 = vpack.c.bf16 %v1973_v43, %v1972_v1  ;;  %v1000_v43 = vld [vmem:[%s4232_s18 + $0x18] sm:$0xff]  ;;  %v2597_v57 = vld [vmem:[%s4419_s8] ss:$0 sm:$0xff] }
 0x13e   : > { %v1307_v58 = vsel %vm1275_vm4, %v3796_v41, %v1306_v15  ;;  %v2573_v41 = vld [vmem:[%s4415_s4 + $0x220] sm:$0xff]  ;;  %vm4089_vm4 = vcmp.ne.s32.totalorder %v400_v14, 15  ;;  %v1501_v17 = vsel %vm1471_vm13, %v1496_v37, %v1500_v6  ;;  %v1979_v15 = vld [vmem:[%s4417_s6 + $0x48] sm:$0xff] }
 0x13f   : > { %1424 = vmatmul.mubr.f32.gmra.mrb[18].mxu0 %v3821_v46  ;;  %v1475_v46 = vrot.slane %v1448_v20, 2  ;;  %v3067_v59 = vpack.c.bf16 %v2574_v39, %v2573_v41  ;;  %v1525_v32 = vsel %vm4089_vm4, %v1481_v51, 0.0  ;;  %v1974_v20 = vld [vmem:[%s4417_s6 + $0x20] sm:$0xff]  ;;  %v2603_v41 = vld [vmem:[%s4417_s6 + $0x88] sm:$0xff] }
 0x140   : > { %3053 = vmatpush1.bf16.msra.mxu0 %v3052_v26  ;;  %2551 = vmatprep.mubr.msk.f32.mxu0 %vm621_vm0, %v3918_v48  ;;  %v3058_v48 = vpack.c.bf16 %v2568_v2, %v2567_v0  ;;  %v1976_v0 = vld [vmem:[%s4417_s6 + $0x30] sm:$0xff]  ;;  %v1977_v2 = vld [vmem:[%s4417_s6 + $0x38] sm:$0xff] }
 0x141   : > { %3054 = vmatprep.subr.bf16.mxu0 %v3261_v31  ;;  %v1477_v27 = vsel %vm1471_vm13, %v1475_v46, %v1476_v4  ;;  %v1978_v4 = vld [vmem:[%s4417_s6 + $0x40] sm:$0xff] }
 0x142   : > { %v3124_v7 = vpack.c.bf16 %v1979_v15, %v1978_v4 }
 0x143   : > { %1429 = vmatmul.mubr.f32.gmra.mrb[20].mxu0 %v3825_v47  ;;  %v3061_v47 = vpack.c.bf16 %v2570_v9, %v2569_v25  ;;  %v1982_v9 = vld [vmem:[%s4417_s6 + $0x60] sm:$0xff] }
 0x144   : > { %3056 = vmatpush1.bf16.msra.mxu0 %v3055_v36  ;;  %2552 = vmatprep.mubr.msk.f32.mxu0 %vm621_vm0, %v1309_v56  ;;  %v1502_v36 = vrot.slane %v1449_v24, 2  ;;  %v3116_v56 = vpack.c.bf16 %v1975_v30, %v1974_v20 }
 0x145   : > { %3057 = vmatprep.subr.bf16.mxu0 %v3261_v31 }
 0x146   : > { %v1503_v46 = vsel %vm1471_vm13, %v1498_v44, %v1502_v36  ;;  %v1980_v44 = vld [vmem:[%s4417_s6 + $0x50] sm:$0xff]  ;;  %v2605_v36 = vld [vmem:[%s4417_s6 + $0x98] sm:$0xff] }
 0x147   : > { %1434 = vmatmul.mubr.f32.gmra.mrb[22].mxu0 %v1307_v58 }
 0x148   : > { %3059 = vmatpush1.bf16.msra.mxu0 %v3058_v48  ;;  %2577 = vmatprep.mubr.msk.f32.mxu0 %vm621_vm0, %v1477_v27  ;;  %v1981_v48 = vld [vmem:[%s4417_s6 + $0x58] sm:$0xff]  ;;  %v1983_v27 = vld [vmem:[%s4417_s6 + $0x68] sm:$0xff] }
 0x149   : > { %3060 = vmatprep.subr.bf16.mxu0 %v3261_v31  ;;  %v3128_v25 = vpack.c.bf16 %v1981_v48, %v1980_v44  ;;  %v3132_v58 = vpack.c.bf16 %v1983_v27, %v1982_v9  ;;  %v2607_v44 = vld [vmem:[%s4417_s6 + $0xa8] sm:$0xff] }
 0x14c   : > { %3062 = vmatpush1.bf16.msra.mxu0 %v3061_v47  ;;  %v1984_v47 = vld [vmem:[%s4417_s6 + $0x70] sm:$0xff] }
 0x14d   : > { %3063 = vmatprep.subr.bf16.mxu0 %v3261_v31  ;;  %v3136_v22 = vpack.c.bf16 %v1985_v34, %v1984_v47  ;;  %v2608_v34 = vld [vmem:[%s4417_s6 + $0xb0] sm:$0xff] }
 0x150   : > { %3065 = vmatpush1.bf16.msra.mxu0 %v3064_v35  ;;  %v2602_v35 = vld [vmem:[%s4417_s6 + $0x80] sm:$0xff] }
 0x151   : > { %3066 = vmatprep.subr.bf16.mxu0 %v3261_v31  ;;  %v3140_v39 = vpack.c.bf16 %v2603_v41, %v2602_v35 }
 0x154   : > { %3068 = vmatpush1.bf16.msra.mxu0 %v3067_v59 }
 0x155   : > { %3069 = vmatprep.subr.bf16.mxu0 %v3261_v31  ;;  %v1488_v31 = vrot.slane %v3752_v8, 2  ;;  %v1497_v8 = vsel %vm1471_vm13, %v1492_v63, %v1496_v37  ;;  %v997_v37 = vld [vmem:[%s4232_s18] sm:$0xff] }
 0x157   : > { %v1489_v26 = vsel %vm1471_vm13, %v1484_v55, %v1488_v31  ;;  %v1493_v13 = vsel %vm1471_vm13, %v1488_v31, %v1492_v63 }
 0x158   : > { %3071 = vmatpush1.bf16.msra.mxu0 %v3070_v19  ;;  %v1529_v61 = vsel %vm4105_vm5, %v1489_v26, 0.0 }
 0x15b   : > { %1652 = vmatmul.mubr.f32.vlgmr.msra.gmra.mrb[8].mxu0 %v1474_v42 }
 0x15c   : > { %2578 = vmatprep.mubr.msk.f32.mxu0 %vm621_vm0, %v1525_v32 }
 0x15f   : > { %2579 = vmatmul.mubr.msk.f32.gmra.mrb[10].mxu0 %vm4089_vm4, %v3763_v18  ;;  %v1450_v18 = vld [vmem:[#allocation2 + $0x88] sm:$0x3] }
 0x160   : > { %2580 = vmatprep.mubr.msk.f32.mxu0 %vm621_vm0, %v1485_v12  ;;  %v1504_v5 = vrot.slane %v1450_v18, 2 }
 0x163   : > { %1662 = vmatmul.mubr.f32.gmra.mrb[12].mxu0 %v3777_v33  ;;  %v1533_v33 = vsel %vm4123_vm6, %v1497_v8, 0.0 }
 0x164   : > { %2581 = vmatprep.mubr.msk.f32.mxu0 %vm621_vm0, %v1529_v61 }
 0x167   : > { %2582 = vmatmul.mubr.msk.f32.gmra.mrb[14].mxu0 %vm4105_vm5, %v3816_v11  ;;  %v1505_v11 = vsel %vm1471_vm13, %v1500_v6, %v1504_v5 }
 0x168   : > { %2583 = vmatprep.mubr.msk.f32.mxu0 %vm621_vm0, %v1493_v13 }
 0x16b   : > { %1672 = vmatmul.mubr.f32.gmra.mrb[16].mxu0 %v3828_v21  ;;  %v1971_v21 = vld [vmem:[%s4417_s6 + $0x8] sm:$0xff] }
 0x16c   : > { %2584 = vmatprep.mubr.msk.f32.mxu0 %vm621_vm0, %v1533_v33  ;;  %v3108_v38 = vpack.c.bf16 %v1971_v21, %v1970_v3  ;;  %v998_v33 = vld [vmem:[%s4232_s18 + $0x8] sm:$0xff]  ;;  %v999_v3 = vld [vmem:[%s4232_s18 + $0x10] sm:$0xff] }
 0x16e   : > { %3109 = vmatprep.subr.bf16.mxu1 %v3108_v38 }
 0x16f   : > { %2585 = vmatmul.mubr.msk.f32.gmra.mrb[18].mxu0 %vm4123_vm6, %v3831_v29  ;;  %v1537_v29 = vsel %vm4140_vm7, %v1505_v11, 0.0  ;;  %3111 = vmatpush3.bf16.msra.mxu1 %v3108_v38 }
 0x170   : > { %2586 = vmatprep.mubr.msk.f32.mxu0 %vm621_vm0, %v1501_v17  ;;  %3113 = vmatprep.subr.bf16.mxu1 %v3112_v49 }
 0x173   : > { %1682 = vmatmul.mubr.f32.gmra.mrb[20].mxu0 %v3841_v45  ;;  %3115 = vmatpush3.bf16.msra.mxu1 %v3112_v49  ;;  %v3120_v45 = vpack.c.bf16 %v1977_v2, %v1976_v0  ;;  %v1001_v2 = vld [vmem:[%s4232_s18 + $0x20] sm:$0xff] }
 0x174   : > { %2587 = vmatprep.mubr.msk.f32.mxu0 %vm621_vm0, %v1537_v29  ;;  %3117 = vmatprep.subr.bf16.mxu1 %v3116_v56  ;;  %v2604_v29 = vld [vmem:[%s4417_s6 + $0x90] sm:$0xff] }
 0x177   : > { %2588 = vmatmul.mubr.msk.f32.gmra.mrb[22].mxu0 %vm4140_vm7, %v1503_v46  ;;  %3119 = vmatpush3.bf16.msra.mxu1 %v3116_v56 }
 0x178   : > { %3121 = vmatprep.subr.bf16.mxu1 %v3120_v45 }
 0x17b   : > { %3123 = vmatpush3.bf16.msra.mxu1 %v3120_v45  ;;  %v3144_v45 = vpack.c.bf16 %v2605_v36, %v2604_v29  ;;  %v2615_v29 = vld [vmem:[%s4417_s6 + $0xe8] sm:$0xff] }
 0x17c   : > { %3125 = vmatprep.subr.bf16.mxu1 %v3124_v7 }
 0x17f   : > { %3127 = vmatpush3.bf16.msra.mxu1 %v3124_v7  ;;  %v2606_v7 = vld [vmem:[%s4417_s6 + $0xa0] sm:$0xff] }
 0x180   : > { %3129 = vmatprep.subr.bf16.mxu1 %v3128_v25  ;;  %v3148_v27 = vpack.c.bf16 %v2607_v44, %v2606_v7  ;;  %v2619_v7 = vld [vmem:[%s4417_s6 + $0x108] sm:$0xff]  ;;  %v2620_v44 = vld [vmem:[%s4417_s6 + $0x110] sm:$0xff] }
 0x183   : > { %3131 = vmatpush3.bf16.msra.mxu1 %v3128_v25  ;;  %v1002_v25 = vld [vmem:[%s4232_s18 + $0x28] sm:$0xff] }
 0x184   : > { %3133 = vmatprep.subr.bf16.mxu1 %v3132_v58 }
 0x187   : > { %3135 = vmatpush3.bf16.msra.mxu1 %v3132_v58 }
 0x188   : > { %3137 = vmatprep.subr.bf16.mxu1 %v3136_v22 }
 0x18b   : > { %3139 = vmatpush3.bf16.msra.mxu1 %v3136_v22  ;;  %v2609_v22 = vld [vmem:[%s4417_s6 + $0xb8] sm:$0xff] }
 0x18c   : > { %3141 = vmatprep.subr.bf16.mxu1 %v3140_v39 }
 0x1d2   : > { %v4212_v59 = vpop.f32.mrb[8].mxu1 }
 0x1d3   : > { %v1903_v28 = vpop.f32.mrb[9].mxu1  ;;  %v1946_v14 = vadd.f32 %v2597_v57, %v4212_v59 }
 0x1d6   : > { %v4214_v60 = vpop.f32.mrb[10].mxu1 }
 0x1d7   : > { %v1908_v62 = vpop.f32.mrb[11].mxu1 }
 0x1d8   : > { %v3152_v62 = vpack.c.bf16 %v2609_v22, %v2608_v34  ;;  %v2630_v34 = vld [vmem:[%s4417_s6 + $0x160] sm:$0xff]  ;;  %v2631_v22 = vld [vmem:[%s4417_s6 + $0x168] sm:$0xff] }
 0x1da   : > { %v4216_v50 = vpop.f32.mrb[12].mxu1 }
 0x1db   : > { %v1913_v19 = vpop.f32.mrb[13].mxu1 }
 0x1de   : > { %v4218_v40 = vpop.f32.mrb[14].mxu1 }
 0x1df   : > { %v1918_v51 = vpop.f32.mrb[15].mxu1  ;;  %v1949_v16 = vadd.f32 %v2597_v57, %v4218_v40 }
 0x1e2   : > { %v4220_v32 = vpop.f32.mrb[16].mxu1 }
 0x1e3   : > { %v1923_v55 = vpop.f32.mrb[17].mxu1 }
 0x1e4   : > { %v2610_v55 = vld [vmem:[%s4417_s6 + $0xc0] sm:$0xff] }
 0x1e6   : > { %v4222_v42 = vpop.f32.mrb[18].mxu1 }
 0x1e7   : > { %v1928_v31 = vpop.f32.mrb[19].mxu1 }
 0x1e8   : > { %v2611_v31 = vld [vmem:[%s4417_s6 + $0xc8] sm:$0xff] }
 0x1ea   : > { %v4224_v12 = vpop.f32.mrb[20].mxu1 }
 0x1eb   : > { %v1933_v26 = vpop.f32.mrb[21].mxu1 }
 0x1ee   : > { %v4226_v61 = vpop.f32.mrb[22].mxu1 }
 0x1ef   : > { %v1938_v63 = vpop.f32.mrb[23].mxu1 }
 0x1f0   : > { %v1004_v63 = vld [vmem:[%s4232_s18 + $0x38] sm:$0xff] }
 0x22e   : > { %v1653_v13 = vpop.f32.mrb[8].mxu0 }
 0x22f   : > { %v4235_v8 = vadd.f32 %v1653_v13, %v997_v37  ;;  %v1655_v18 = vpop.f32.mrb[9].mxu0  ;;  %v3156_v13 = vpack.c.bf16 %v2611_v31, %v2610_v55 }
 0x231   : > { %v1700_v6 = vmax.f32 %v4235_v8, 0.0  ;;  %v2623_v8 = vld [vmem:[%s4417_s6 + $0x128] sm:$0xff] }
 0x232   : > { %v1658_v5 = vpop.f32.mrb[10].mxu0 }
 0x233   : > { %1708 = vst [vmem:[#allocation3 + $0x1] sm:$0xff] %v1700_v6  ;;  %v4241_v17 = vadd.f32 %v1658_v5, %v998_v33  ;;  %v1660_v11 = vpop.f32.mrb[11].mxu0  ;;  %v2612_v5 = vld [vmem:[%s4417_s6 + $0xd0] sm:$0xff] }
 0x234   : > { %v2613_v11 = vld [vmem:[%s4417_s6 + $0xd8] sm:$0xff] }
 0x235   : > { %v1701_v21 = vmax.f32 %v4241_v17, 0.0 }
 0x236   : > { %v1663_v1 = vpop.f32.mrb[12].mxu0 }
 0x237   : > { %1709 = vst [vmem:[#allocation3 + $0x9] sm:$0xff] %v1701_v21  ;;  %v4247_v24 = vadd.f32 %v1663_v1, %v999_v3  ;;  %v1665_v38 = vpop.f32.mrb[13].mxu0 }
 0x239   : > { %v1702_v49 = vmax.f32 %v4247_v24, 0.0  ;;  %v2627_v24 = vld [vmem:[%s4417_s6 + $0x148] sm:$0xff] }
 0x23a   : > { %v1668_v20 = vpop.f32.mrb[14].mxu0  ;;  %v1954_v30 = vld [vmem:[#allocation3] sm:$0xff] }
 0x23b   : > { %1710 = vst [vmem:[#allocation3 + $0x11] sm:$0xff] %v1702_v49  ;;  %v4259_v56 = vadd.f32 %v1668_v20, %v1000_v43  ;;  %v1670_v0 = vpop.f32.mrb[15].mxu0  ;;  %2832 = vmatprep.mubr.msk.f32.mxu1 %vm3578_vm3, %v1954_v30  ;;  %v3160_v43 = vpack.c.bf16 %v2613_v11, %v2612_v5  ;;  %v2614_v30 = vld [vmem:[%s4417_s6 + $0xe0] sm:$0xff]  ;;  %v1948_v5 = vadd.f32 %v2597_v57, %v4216_v50 }
 0x23c   : > { %v3164_v36 = vpack.c.bf16 %v2615_v29, %v2614_v30  ;;  %v2616_v0 = vld [vmem:[%s4417_s6 + $0xf0] sm:$0xff]  ;;  %v1953_v29 = vadd.f32 %v2597_v57, %v4226_v61 }
 0x23d   : > { %v1703_v46 = vmax.f32 %v4259_v56, 0.0  ;;  %v2628_v56 = vld [vmem:[%s4417_s6 + $0x150] sm:$0xff] }
 0x23e   : > { %v1673_v4 = vpop.f32.mrb[16].mxu0  ;;  %v1955_v15 = vld [vmem:[#allocation3 + $0x8] sm:$0xff] }
 0x23f   : > { %1711 = vst [vmem:[#allocation3 + $0x19] sm:$0xff] %v1703_v46  ;;  %v4273_v48 = vadd.f32 %v1673_v4, %v1001_v2  ;;  %v1675_v52 = vpop.f32.mrb[17].mxu0  ;;  %2833 = vmatmul.mubr.f32.vlgmr.msra.gmra.mrb[24].mxu1 %v1955_v15  ;;  %v2617_v2 = vld [vmem:[%s4417_s6 + $0xf8] sm:$0xff]  ;;  %v2618_v15 = vld [vmem:[%s4417_s6 + $0x100] sm:$0xff] }
 0x240   : > { %3143 = vmatpush3.bf16.msra.mxu1 %v3140_v39  ;;  %v1003_v39 = vld [vmem:[%s4232_s18 + $0x30] sm:$0xff]  ;;  %v3172_v10 = vpack.c.bf16 %v2619_v7, %v2618_v15  ;;  %v2621_v52 = vld [vmem:[%s4417_s6 + $0x118] sm:$0xff] }
 0x241   : > { %v1704_v9 = vmax.f32 %v4273_v48, 0.0  ;;  %3145 = vmatprep.subr.bf16.mxu1 %v3144_v45  ;;  %v2237_v48 = vld [vmem:[#allocation3 + $0x2] sm:$0xff] }
 0x242   : > { %v1678_v58 = vpop.f32.mrb[18].mxu0  ;;  %v1956_v47 = vld [vmem:[#allocation3 + $0x10] sm:$0xff] }
 0x243   : > { %1712 = vst [vmem:[#allocation3 + $0x21] sm:$0xff] %v1704_v9  ;;  %v4285_v35 = vadd.f32 %v1678_v58, %v1002_v25  ;;  %v1680_v41 = vpop.f32.mrb[19].mxu0  ;;  %2835 = vmatprep.mubr.msk.f32.mxu1 %vm3676_vm11, %v1956_v47  ;;  %v3176_v25 = vpack.c.bf16 %v2621_v52, %v2620_v44  ;;  %v2624_v58 = vld [vmem:[%s4417_s6 + $0x130] sm:$0xff]  ;;  %v2625_v47 = vld [vmem:[%s4417_s6 + $0x138] sm:$0xff] }
 0x244   : > { %3147 = vmatpush3.bf16.msra.mxu1 %v3144_v45  ;;  %v3168_v45 = vpack.c.bf16 %v2617_v2, %v2616_v0  ;;  %v3184_v17 = vpack.c.bf16 %v2625_v47, %v2624_v58  ;;  %v2632_v41 = vld [vmem:[%s4417_s6 + $0x170] sm:$0xff] }
 0x245   : > { %v1705_v28 = vmax.f32 %v4285_v35, 0.0  ;;  %3149 = vmatprep.subr.bf16.mxu1 %v3148_v27  ;;  %v3196_v35 = vpack.c.bf16 %v2631_v22, %v2630_v34 }
 0x246   : > { %v1683_v19 = vpop.f32.mrb[20].mxu0  ;;  %v1957_v51 = vld [vmem:[#allocation3 + $0x18] sm:$0xff] }
 0x247   : > { %1713 = vst [vmem:[#allocation3 + $0x29] sm:$0xff] %v1705_v28  ;;  %v4299_v54 = vadd.f32 %v1683_v19, %v1003_v39  ;;  %v1685_v26 = vpop.f32.mrb[21].mxu0  ;;  %2836 = vmatmul.mubr.f32.gmra.mrb[26].mxu1 %v1957_v51  ;;  %v2633_v39 = vld [vmem:[%s4417_s6 + $0x178] sm:$0xff]  ;;  %v2239_v19 = vld [vmem:[#allocation3 + $0x12] sm:$0xff] }
 0x248   : > { %3151 = vmatpush3.bf16.msra.mxu1 %v3148_v27  ;;  %v2622_v27 = vld [vmem:[%s4417_s6 + $0x120] sm:$0xff] }
 0x249   : > { %v1706_v37 = vmax.f32 %v4299_v54, 0.0  ;;  %3153 = vmatprep.subr.bf16.mxu1 %v3152_v62 }
 0x24a   : > { %v1688_v18 = vpop.f32.mrb[22].mxu0  ;;  %v1958_v33 = vld [vmem:[#allocation3 + $0x20] sm:$0xff] }
 0x24b   : > { %1714 = vst [vmem:[#allocation3 + $0x31] sm:$0xff] %v1706_v37  ;;  %v3211_v3 = vadd.f32 %v1688_v18, %v1004_v63  ;;  %v1690_v1 = vpop.f32.mrb[23].mxu0  ;;  %2838 = vmatprep.mubr.msk.f32.mxu1 %vm3809_vm1, %v1958_v33  ;;  %v2240_v51 = vld [vmem:[#allocation3 + $0x1a] sm:$0xff]  ;;  %v1947_v63 = vadd.f32 %v2597_v57, %v4214_v60 }
 0x24c   : > { %3155 = vmatpush3.bf16.msra.mxu1 %v3152_v62  ;;  %v2238_v62 = vld [vmem:[#allocation3 + $0xa] sm:$0xff] }
 0x24d   : > { %v1707_v38 = vmax.f32 %v3211_v3, 0.0  ;;  %3157 = vmatprep.subr.bf16.mxu1 %v3156_v13 }
 0x24e   : > { %v1959_v20 = vld [vmem:[#allocation3 + $0x28] sm:$0xff] }
 0x24f   : > { %1715 = vst [vmem:[#allocation3 + $0x39] sm:$0xff] %v1707_v38  ;;  %2839 = vmatmul.mubr.f32.gmra.mrb[28].mxu1 %v1959_v20  ;;  %v2241_v55 = vld [vmem:[#allocation3 + $0x22] sm:$0xff] }
 0x250   : > { %3159 = vmatpush3.bf16.msra.mxu1 %v3156_v13 }
 0x251   : > { %3161 = vmatprep.subr.bf16.mxu1 %v3160_v43 }
 0x252   : > { %v1960_v53 = vld [vmem:[#allocation3 + $0x30] sm:$0xff] }
 0x253   : > { %2841 = vmatprep.mubr.msk.f32.mxu1 %vm3884_vm2, %v1960_v53  ;;  %v2242_v31 = vld [vmem:[#allocation3 + $0x2a] sm:$0xff] }
 0x254   : > { %3163 = vmatpush3.bf16.msra.mxu1 %v3160_v43  ;;  %v1950_v43 = vadd.f32 %v2597_v57, %v4220_v32 }
 0x255   : > { %3165 = vmatprep.subr.bf16.mxu1 %v3164_v36 }
 0x256   : > { %v1961_v4 = vld [vmem:[#allocation3 + $0x38] sm:$0xff] }
 0x257   : > { %2842 = vmatmul.mubr.f32.gmra.mrb[30].mxu1 %v1961_v4  ;;  %v2243_v54 = vld [vmem:[#allocation3 + $0x32] sm:$0xff]  ;;  %v2244_v26 = vld [vmem:[#allocation3 + $0x3a] sm:$0xff] }
 0x258   : > { %3167 = vmatpush3.bf16.msra.mxu1 %v3164_v36  ;;  %2876 = vmatprep.mubr.f32.mxu1 %v1700_v6  ;;  %v3180_v6 = vpack.c.bf16 %v2623_v8, %v2622_v27  ;;  %v1952_v36 = vadd.f32 %v2597_v57, %v4224_v12 }
 0x259   : > { %3169 = vmatprep.subr.bf16.mxu1 %v3168_v45 }
 0x25c   : > { %3171 = vmatpush3.bf16.msra.mxu1 %v3168_v45 }
 0x25d   : > { %3173 = vmatprep.subr.bf16.mxu1 %v3172_v10 }
 0x25f   : > { %2877 = vmatmul.mubr.f32.vlgmr.msra.gmra.mrb[32].mxu1 %v1701_v21  ;;  %v2626_v21 = vld [vmem:[%s4417_s6 + $0x140] sm:$0xff] }
 0x260   : > { %2879 = vmatprep.mubr.f32.mxu1 %v1702_v49  ;;  %3175 = vmatpush3.bf16.msra.mxu1 %v3172_v10  ;;  %v3188_v49 = vpack.c.bf16 %v2627_v24, %v2626_v21 }
 0x261   : > { %3177 = vmatprep.subr.bf16.mxu1 %v3176_v25 }
 0x263   : > { %2880 = vmatmul.mubr.f32.gmra.mrb[34].mxu1 %v1703_v46  ;;  %v2629_v46 = vld [vmem:[%s4417_s6 + $0x158] sm:$0xff] }
 0x264   : > { %2882 = vmatprep.mubr.f32.mxu1 %v1704_v9  ;;  %3179 = vmatpush3.bf16.msra.mxu1 %v3176_v25  ;;  %v3192_v9 = vpack.c.bf16 %v2629_v46, %v2628_v56 }
 0x265   : > { %3181 = vmatprep.subr.bf16.mxu1 %v3180_v6 }
 0x267   : > { %2883 = vmatmul.mubr.f32.gmra.mrb[36].mxu1 %v1705_v28  ;;  %v3200_v28 = vpack.c.bf16 %v2633_v39, %v2632_v41 }
 0x268   : > { %2885 = vmatprep.mubr.f32.mxu1 %v1706_v37  ;;  %3183 = vmatpush3.bf16.msra.mxu1 %v3180_v6 }
 0x269   : > { %3185 = vmatprep.subr.bf16.mxu1 %v3184_v17 }
 0x26b   : > { %2886 = vmatmul.mubr.f32.gmra.mrb[38].mxu1 %v1707_v38  ;;  %v1951_v38 = vadd.f32 %v2597_v57, %v4222_v42 }
 0x26c   : > { %3187 = vmatpush3.bf16.msra.mxu1 %v3184_v17  ;;  %2920 = vmatprep.mubr.f32.mxu1 %v2237_v48 }
 0x26d   : > { %3189 = vmatprep.subr.bf16.mxu1 %v3188_v49 }
 0x270   : > { %3191 = vmatpush3.bf16.msra.mxu1 %v3188_v49 }
 0x271   : > { %3193 = vmatprep.subr.bf16.mxu1 %v3192_v9 }
 0x274   : > { %3195 = vmatpush3.bf16.msra.mxu1 %v3192_v9 }
 0x275   : > { %3197 = vmatprep.subr.bf16.mxu1 %v3196_v35 }
 0x278   : > { %3199 = vmatpush3.bf16.msra.mxu1 %v3196_v35 }
 0x279   : > { %3201 = vmatprep.subr.bf16.mxu1 %v3200_v28 }
 0x27c   : > { %3203 = vmatpush3.bf16.msra.mxu1 %v3200_v28 }
 0x27f   : > { %2921 = vmatmul.mubr.msk.f32.vlgmr.msra.gmra.mrb[40].mxu1 %vm4089_vm4, %v2238_v62 }
 0x280   : > { %2923 = vmatprep.mubr.f32.mxu1 %v2239_v19 }
 0x283   : > { %2924 = vmatmul.mubr.msk.f32.gmra.mrb[42].mxu1 %vm4105_vm5, %v2240_v51 }
 0x284   : > { %2926 = vmatprep.mubr.f32.mxu1 %v2241_v55 }
 0x287   : > { %2927 = vmatmul.mubr.msk.f32.gmra.mrb[44].mxu1 %vm4123_vm6, %v2242_v31 }
 0x288   : > { %2929 = vmatprep.mubr.f32.mxu1 %v2243_v54 }
 0x28b   : > { %2930 = vmatmul.mubr.msk.f32.gmra.mrb[46].mxu1 %vm4140_vm7, %v2244_v26 }
 0x312   : > { %v2834_v37 = vpop.f32.mrb[24].mxu1 }
 0x313   : > { %v2092_v13 = vadd.f32 %v2834_v37, %v1947_v63  ;;  %v2052_v18 = vpop.f32.mrb[25].mxu1 }
 0x314   : > { %v2091_v33 = vadd.f32 %v2052_v18, %v1946_v14 }
 0x31a   : > { %v2837_v11 = vpop.f32.mrb[26].mxu1 }
 0x31b   : > { %v2094_v3 = vadd.f32 %v2837_v11, %v1949_v16  ;;  %v2062_v23 = vpop.f32.mrb[27].mxu1 }
 0x31c   : > { %v2093_v1 = vadd.f32 %v2062_v23, %v1948_v5 }
 0x322   : > { %v2840_v20 = vpop.f32.mrb[28].mxu1 }
 0x323   : > { %v2096_v60 = vadd.f32 %v2840_v20, %v1951_v38  ;;  %v2072_v30 = vpop.f32.mrb[29].mxu1 }
 0x324   : > { %v2095_v59 = vadd.f32 %v2072_v30, %v1950_v43 }
 0x32a   : > { %v2843_v53 = vpop.f32.mrb[30].mxu1 }
 0x32b   : > { %v2098_v40 = vadd.f32 %v2843_v53, %v1953_v29  ;;  %v2082_v0 = vpop.f32.mrb[31].mxu1 }
 0x32c   : > { %v2097_v50 = vadd.f32 %v2082_v0, %v1952_v36 }
 0x332   : > { %v2878_v2 = vpop.f32.mrb[32].mxu1 }
 0x333   : > { %v2230_v45 = vadd.f32 %v2878_v2, %v2092_v13  ;;  %v2190_v4 = vpop.f32.mrb[33].mxu1 }
 0x334   : > { %v2229_v15 = vadd.f32 %v2190_v4, %v2091_v33 }
 0x336   : > { %v2881_v42 = vpop.f32.mrb[34].mxu1 }
 0x337   : > { %v2232_v7 = vadd.f32 %v2881_v42, %v2094_v3  ;;  %v2200_v32 = vpop.f32.mrb[35].mxu1 }
 0x338   : > { %v2231_v10 = vadd.f32 %v2200_v32, %v2093_v1 }
 0x33a   : > { %v2884_v44 = vpop.f32.mrb[36].mxu1 }
 0x33b   : > { %v2234_v52 = vadd.f32 %v2884_v44, %v2096_v60  ;;  %v2210_v25 = vpop.f32.mrb[37].mxu1 }
 0x33c   : > { %v2233_v27 = vadd.f32 %v2210_v25, %v2095_v59 }
 0x33e   : > { %v2887_v61 = vpop.f32.mrb[38].mxu1 }
 0x33f   : > { %v2236_v8 = vadd.f32 %v2887_v61, %v2098_v40  ;;  %v2220_v12 = vpop.f32.mrb[39].mxu1 }
 0x340   : > { %v2235_v6 = vadd.f32 %v2220_v12, %v2097_v50 }
 0x352   : > { %v2922_v58 = vpop.f32.mrb[40].mxu1 }
 0x353   : > { %v2376_v47 = vadd.f32 %v2922_v58, %v2230_v45  ;;  %v2336_v17 = vpop.f32.mrb[41].mxu1 }
 0x354   : > { %v2375_v21 = vadd.f32 %v2336_v17, %v2229_v15 }
 0x355   : > { %2384 = vst [vmem:[%s378_s27 + $0x8] sm:$0xff] %v2376_v47 }
 0x356   : > { %2383 = vst [vmem:[%s378_s27] sm:$0xff] %v2375_v21  ;;  %v2925_v24 = vpop.f32.mrb[42].mxu1 }
 0x357   : > { %v2378_v49 = vadd.f32 %v2925_v24, %v2232_v7  ;;  %v2346_v56 = vpop.f32.mrb[43].mxu1 }
 0x358   : > { %v2377_v46 = vadd.f32 %v2346_v56, %v2231_v10 }
 0x359   : > { %2386 = vst [vmem:[%s378_s27 + $0x18] sm:$0xff] %v2378_v49 }
 0x35a   : > { %2385 = vst [vmem:[%s378_s27 + $0x10] sm:$0xff] %v2377_v46  ;;  %v2928_v48 = vpop.f32.mrb[44].mxu1 }
 0x35b   : > { %v2380_v9 = vadd.f32 %v2928_v48, %v2234_v52  ;;  %v2356_v34 = vpop.f32.mrb[45].mxu1 }
 0x35c   : > { %v2379_v22 = vadd.f32 %v2356_v34, %v2233_v27 }
 0x35d   : > { %2388 = vst [vmem:[%s378_s27 + $0x28] sm:$0xff] %v2380_v9 }
 0x35e   : > { %2387 = vst [vmem:[%s378_s27 + $0x20] sm:$0xff] %v2379_v22  ;;  %v2931_v35 = vpop.f32.mrb[46].mxu1 }
 0x35f   : > { %v2382_v41 = vadd.f32 %v2931_v35, %v2236_v8  ;;  %v2366_v39 = vpop.f32.mrb[47].mxu1 }
 0x360   : > { %v2381_v28 = vadd.f32 %v2366_v39, %v2235_v6 }
 0x361   : > { %2390 = vst [vmem:[%s378_s27 + $0x38] sm:$0xff] %v2382_v41 }
 0x362   : > { %2389 = vst [vmem:[%s378_s27 + $0x30] sm:$0xff] %v2381_v28 }
 0x363 PF: > { %s19_s30 = sadd.s32 1, %s3259_s30  }
 0x364   : > { %p16_p4 = scmp.ge.s32.totalorder %s19_s30, 4  }
 0x366   :  { %18 = sbr.rel (!%p16_p4) target bundleno = 1 (0x1), region = 97 }

</bundles_post_ra>
